<compile_context>
chip_gen: v7x
topology: tpu7x:2x2x1
jax: 0.10.0
libtpu: 0.0.40
codegen_flags: <defaults>
</compile_context>

<pallas_src>
import functools
import math
from dataclasses import dataclass

import jax
import jax.numpy as jnp
from jax import lax
from jax.experimental import pallas as pl
from jax.experimental.pallas import tpu as pltpu


# ---------------------------------------------------------------------------
# Hardware-generation tiling / VMEM configuration.
# ---------------------------------------------------------------------------
@dataclass(frozen=True)
class HwConfig:
    tile_tok: int        # token-row tile for linears / MLP
    tile_n: int          # output-feature tile for linears
    tile_k: int          # reduction (input-feature) tile for linears
    tile_f: int          # ffn reduction tile for the fused MLP
    tile_q: int          # attention query tile
    tile_kv: int         # attention key/value tile
    vmem_cap: int        # max vmem_limit_bytes we are willing to request
    default_vmem_budget: int = 16 * 1024 * 1024  # below default scoped limit


def get_hw_config() -> HwConfig:
    try:
        kind = jax.devices()[0].device_kind.lower()
    except Exception:
        kind = ""
    if "v5" in kind:
        # v5e: slow HBM -> large token tiles to cut weight re-streaming.
        return HwConfig(tile_tok=512, tile_n=512, tile_k=512, tile_f=512,
                        tile_q=128, tile_kv=256, vmem_cap=100 * 2**20)
    if "v7" in kind:
        # v7x: only 64 MiB VMEM/TC -> tighter tiles and request cap.
        return HwConfig(tile_tok=256, tile_n=256, tile_k=512, tile_f=256,
                        tile_q=256, tile_kv=256, vmem_cap=48 * 2**20)
    # v6e (default)
    return HwConfig(tile_tok=512, tile_n=512, tile_k=512, tile_f=512,
                    tile_q=256, tile_kv=512, vmem_cap=100 * 2**20)


def _round_up(x, m):
    return ((x + m - 1) // m) * m


def _sublane_multiple(dtype):
    # 8 rows per vreg sublane group for 4-byte, 16 for bf16, 32 for int8.
    return max(8, 32 // jnp.dtype(dtype).itemsize)


def _pad_axis(a, axis, target):
    if a.shape[axis] == target:
        return a
    widths = [(0, 0)] * a.ndim
    widths[axis] = (0, target - a.shape[axis])
    return jnp.pad(a, widths)


def _pad2(a, rows, cols):
    r, c = a.shape
    if r == rows and c == cols:
        return a
    return jnp.pad(a, ((0, rows - r), (0, cols - c)))


def _compiler_params(cfg, dim_semantics, vmem_needed):
    kwargs = dict(dimension_semantics=dim_semantics)
    if vmem_needed > cfg.default_vmem_budget:
        kwargs["vmem_limit_bytes"] = int(min(int(vmem_needed * 1.3), cfg.vmem_cap))
    return pltpu.CompilerParams(**kwargs)


def _pick_head_group(num_heads, hn):
    """Smallest head group (dividing num_heads) whose packed width is a
    multiple of 128 lanes; fall back to all heads (== full feature dim)."""
    for g in range(1, num_heads + 1):
        if num_heads % g == 0 and (g * hn) % 128 == 0:
            return g
    return num_heads


# ---------------------------------------------------------------------------
# K-tiled multi-output linear: out_i = x @ W_i.T + b_i   (PyTorch [out,in] W).
# Grid: (token tiles, out-feature tiles, K tiles); f32 VMEM accumulators.
# ---------------------------------------------------------------------------
def _fused_linear_kernel(x_ref, *refs, n_out):
    w_refs = refs[:n_out]
    b_refs = refs[n_out:2 * n_out]
    o_refs = refs[2 * n_out:3 * n_out]
    a_refs = refs[3 * n_out:]

    kk = pl.program_id(2)

    @pl.when(kk == 0)
    def _init():
        for a in a_refs:
            a[...] = jnp.zeros_like(a)

    x = x_ref[...]
    for w, a in zip(w_refs, a_refs):
        a[...] += lax.dot_general(x, w[...],
                                  dimension_numbers=(((1,), (1,)), ((), ())),
                                  preferred_element_type=jnp.float32)

    @pl.when(kk == pl.num_programs(2) - 1)
    def _finalize():
        for b_r, o_r, a_r in zip(b_refs, o_refs, a_refs):
            o_r[...] = (a_r[...] + b_r[...]).astype(o_r.dtype)


def fused_linear_pallas(x, ws, bs, *, cfg, out_dtype=None):
    n_out = len(ws)
    N, K = x.shape
    O = ws[0].shape[0]
    out_dtype = out_dtype or x.dtype
    itm = jnp.dtype(x.dtype).itemsize
    o_itm = jnp.dtype(out_dtype).itemsize
    smul = _sublane_multiple(x.dtype)

    tm = cfg.tile_tok if N > cfg.tile_tok else _round_up(N, smul)
    tn = cfg.tile_n if O > cfg.tile_n else O
    tk = cfg.tile_k if K > cfg.tile_k else K

    def step_bytes(tm_, tn_, tk_):
        return (2 * tm_ * tk_ * itm                       # x block
                + 2 * n_out * (tn_ * tk_ * itm + tn_ * 4)  # weights + biases
                + 2 * n_out * tm_ * tn_ * o_itm            # outputs
                + n_out * tm_ * tn_ * 4)                   # f32 accumulators

    while step_bytes(tm, tn, tk) > cfg.vmem_cap and tm > smul:
        tm = max(smul, tm // 2)
    while step_bytes(tm, tn, tk) > cfg.vmem_cap and tk > 128:
        tk = max(128, tk // 2)

    Np, Op, Kp = _round_up(N, tm), _round_up(O, tn), _round_up(K, tk)
    xp = _pad2(x, Np, Kp)
    wps = [_pad2(w, Op, Kp) for w in ws]
    bps = [_pad2(b.astype(jnp.float32).reshape(1, -1), 1, Op) for b in bs]

    grid = (Np // tm, Op // tn, Kp // tk)
    in_specs = ([pl.BlockSpec((tm, tk), lambda i, j, kk: (i, kk))]
                + [pl.BlockSpec((tn, tk), lambda i, j, kk: (j, kk))] * n_out
                + [pl.BlockSpec((1, tn), lambda i, j, kk: (0, j))] * n_out)
    out_specs = tuple(pl.BlockSpec((tm, tn), lambda i, j, kk: (i, j))
                      for _ in range(n_out))
    out_shape = tuple(jax.ShapeDtypeStruct((Np, Op), out_dtype)
                      for _ in range(n_out))
    scratch = [pltpu.VMEM((tm, tn), jnp.float32) for _ in range(n_out)]

    vmem_needed = step_bytes(tm, tn, tk)
    flops = 2 * Np * Kp * Op * n_out
    bytes_accessed = ((xp.size + sum(w.size for w in wps)) * itm
                      + sum(b.size for b in bps) * 4 + n_out * Np * Op * o_itm)

    outs = pl.pallas_call(
        functools.partial(_fused_linear_kernel, n_out=n_out),
        out_shape=out_shape,
        grid_spec=pltpu.PrefetchScalarGridSpec(
            num_scalar_prefetch=0,
            grid=grid,
            in_specs=in_specs,
            out_specs=out_specs,
            scratch_shapes=scratch),
        compiler_params=_compiler_params(cfg, ("parallel", "parallel", "arbitrary"),
                                         vmem_needed),
        cost_estimate=pl.CostEstimate(flops=int(flops), transcendentals=0,
                                      bytes_accessed=int(bytes_accessed)),
    )(xp, *wps, *bps)
    if not isinstance(outs, (list, tuple)):
        outs = (outs,)
    return tuple(o[:N, :O] for o in outs)


# ---------------------------------------------------------------------------
# Fused MLP: out = (x @ W1.T + b1) @ W2.T + b2, tiled over tokens and the ffn
# dim F, with a f32 VMEM accumulator (init at f==0, finalize + bias at last).
# ---------------------------------------------------------------------------
def _mlp_kernel(x_ref, w1_ref, b1_ref, w2_ref, b2_ref, o_ref, acc_ref):
    f = pl.program_id(1)

    @pl.when(f == 0)
    def _init():
        acc_ref[...] = jnp.zeros_like(acc_ref)

    h = lax.dot_general(x_ref[...], w1_ref[...],
                        dimension_numbers=(((1,), (1,)), ((), ())),
                        preferred_element_type=jnp.float32)
    h = h + b1_ref[...]
    acc_ref[...] += lax.dot_general(h.astype(w2_ref.dtype), w2_ref[...],
                                    dimension_numbers=(((1,), (1,)), ((), ())),
                                    preferred_element_type=jnp.float32)

    @pl.when(f == pl.num_programs(1) - 1)
    def _finalize():
        o_ref[...] = (acc_ref[...] + b2_ref[...]).astype(o_ref.dtype)


def mlp_pallas(x, w1, b1, w2, b2, *, cfg, out_dtype=None):
    N, H = x.shape
    F = w1.shape[0]
    out_dtype = out_dtype or x.dtype
    itm = jnp.dtype(x.dtype).itemsize
    o_itm = jnp.dtype(out_dtype).itemsize
    smul = _sublane_multiple(x.dtype)

    tm = cfg.tile_tok if N > cfg.tile_tok else _round_up(N, smul)
    tf = cfg.tile_f if F > cfg.tile_f else F

    def step_bytes(tm_, tf_):
        return (2 * tm_ * H * itm + 2 * tf_ * H * itm + 2 * tf_ * 4
                + 2 * H * tf_ * itm + 2 * H * 4
                + 2 * tm_ * H * o_itm + tm_ * H * 4 + tm_ * tf_ * 4)

    # v7x (and any over-budget config): shrink token / F tiles to fit VMEM.
    while step_bytes(tm, tf) > cfg.vmem_cap and tm > smul:
        tm = max(smul, tm // 2)
    while step_bytes(tm, tf) > cfg.vmem_cap and tf > 128:
        tf = max(128, tf // 2)

    Np, Fp = _round_up(N, tm), _round_up(F, tf)
    xp = _pad2(x, Np, H)
    w1p = _pad2(w1, Fp, H)
    b1p = _pad2(b1.astype(jnp.float32).reshape(1, -1), 1, Fp)
    w2p = _pad2(w2, H, Fp)
    b2p = b2.astype(jnp.float32).reshape(1, H)

    vmem_needed = step_bytes(tm, tf)
    flops = 4 * Np * H * Fp
    bytes_accessed = ((xp.size + w1p.size + w2p.size) * itm
                      + (b1p.size + b2p.size) * 4 + Np * H * o_itm)

    out = pl.pallas_call(
        _mlp_kernel,
        out_shape=jax.ShapeDtypeStruct((Np, H), out_dtype),
        grid_spec=pltpu.PrefetchScalarGridSpec(
            num_scalar_prefetch=0,
            grid=(Np // tm, Fp // tf),
            in_specs=[
                pl.BlockSpec((tm, H), lambda i, f: (i, 0)),
                pl.BlockSpec((tf, H), lambda i, f: (f, 0)),
                pl.BlockSpec((1, tf), lambda i, f: (0, f)),
                pl.BlockSpec((H, tf), lambda i, f: (0, f)),
                pl.BlockSpec((1, H), lambda i, f: (0, 0)),
            ],
            out_specs=pl.BlockSpec((tm, H), lambda i, f: (i, 0)),
            scratch_shapes=[pltpu.VMEM((tm, H), jnp.float32)]),
        compiler_params=_compiler_params(cfg, ("parallel", "arbitrary"), vmem_needed),
        cost_estimate=pl.CostEstimate(flops=int(flops), transcendentals=0,
                                      bytes_accessed=int(bytes_accessed)),
    )(xp, w1p, b1p, w2p, b2p)
    return out[:N]


# ---------------------------------------------------------------------------
# Block-sparse flash attention (dense-masked equivalent of the CSR kernels).
# Grid: (batch, head-group, q-tiles, kv-steps); kv axis is "arbitrary" and
# carries an online-softmax accumulator in VMEM scratch.  Fully masked KV
# tiles are skipped (no DMA re-issue, no compute) using scalar-prefetched
# compacted KV-tile lists.
# ---------------------------------------------------------------------------
def _flash_attention_kernel(cnt_ref, ids_ref, q_ref, k_ref, v_ref, mask_ref,
                            o_ref, m_ref, l_ref, acc_ref, *, scale, G, hn):
    b = pl.program_id(0)
    qi = pl.program_id(2)
    kv = pl.program_id(3)
    nQ = pl.num_programs(2)
    nK = pl.num_programs(3)

    @pl.when(kv == 0)
    def _init():
        m_ref[...] = jnp.full_like(m_ref, -1e30)
        l_ref[...] = jnp.zeros_like(l_ref)
        acc_ref[...] = jnp.zeros_like(acc_ref)

    count = cnt_ref[b * nQ + qi]

    @pl.when(kv < count)
    def _compute():
        keep = mask_ref[...] != 0                       # (tq, tk) bool
        for h in range(G):                              # static unroll over packed heads
            qh = q_ref[:, h * hn:(h + 1) * hn]
            kh = k_ref[:, h * hn:(h + 1) * hn]
            s = lax.dot_general(qh, kh,
                                dimension_numbers=(((1,), (1,)), ((), ())),
                                preferred_element_type=jnp.float32) * scale
            s = jnp.where(keep, s, jnp.float32(-1e30))
            m_prev = m_ref[h]
            m_new = jnp.maximum(m_prev, jnp.max(s, axis=-1, keepdims=True))
            alpha = jnp.exp(m_prev - m_new)
            p = jnp.where(keep, jnp.exp(s - m_new), 0.0)
            l_ref[h] = alpha * l_ref[h] + jnp.sum(p, axis=-1, keepdims=True)
            vh = v_ref[:, h * hn:(h + 1) * hn]
            pv = lax.dot_general(p.astype(vh.dtype), vh,
                                 dimension_numbers=(((1,), (0,)), ((), ())),
                                 preferred_element_type=jnp.float32)
            acc_ref[h] = alpha * acc_ref[h] + pv
            m_ref[h] = m_new

    @pl.when(kv == nK - 1)
    def _finalize():
        for h in range(G):
            l = l_ref[h]
            inv = pl.reciprocal(jnp.where(l == 0.0, 1.0, l), approx=True)
            o_ref[:, h * hn:(h + 1) * hn] = (acc_ref[h] * inv).astype(o_ref.dtype)


def attention_pallas(q, k, v, mask_i8, *, num_heads, cfg, out_dtype=None):
    # q, k, v: (B, S, H) head-major features; mask_i8: (B, S, S), nonzero == attend.
    B, S, H = q.shape
    hn = H // num_heads
    out_dtype = out_dtype or q.dtype
    scale = 1.0 / math.sqrt(hn)

    G = _pick_head_group(num_heads, hn)
    nG = num_heads // G
    Ghn = G * hn

    smul = _sublane_multiple(q.dtype)
    tq = cfg.tile_q if S > cfg.tile_q else _round_up(S, smul)
    tk = cfg.tile_kv if S > cfg.tile_kv else _round_up(S, smul)
    Sq = _round_up(S, tq)
    Sk = _round_up(S, tk)
    nQ, nK = Sq // tq, Sk // tk

    qp = _pad_axis(q, 1, Sq)
    kp = _pad_axis(k, 1, Sk)
    vp = _pad_axis(v, 1, Sk)
    mp = _pad_axis(_pad_axis(mask_i8, 1, Sq), 2, Sk)   # padded rows/cols masked out

    # Block-sparsity metadata (scalar-prefetched): per (batch, q-tile) compacted
    # list of nonzero KV tiles + counts; padded entries repeat the last valid
    # index so no new DMA is issued for skipped steps.
    blocks = mp.reshape(B, nQ, tq, nK, tk)
    bm = jnp.any(blocks != 0, axis=(2, 4))                     # (B, nQ, nK)
    counts = jnp.sum(bm, axis=-1).astype(jnp.int32)            # (B, nQ)
    order = jnp.argsort(jnp.logical_not(bm), axis=-1, stable=True).astype(jnp.int32)
    j = jnp.arange(nK, dtype=jnp.int32)
    jidx = jnp.minimum(j, jnp.maximum(counts[..., None] - 1, 0))
    kv_ids = jnp.take_along_axis(order, jidx, axis=-1).astype(jnp.int32)
    counts_flat = counts.reshape(-1)
    kvids_flat = kv_ids.reshape(-1)

    def q_map(b, g, qi, kv, cnt, ids):
        return (b, qi, g)

    def kv_map(b, g, qi, kv, cnt, ids):
        return (b, ids[(b * nQ + qi) * nK + kv], g)

    def m_map(b, g, qi, kv, cnt, ids):
        return (b, qi, ids[(b * nQ + qi) * nK + kv])

    def o_map(b, g, qi, kv, cnt, ids):
        return (b, qi, g)

    itm = jnp.dtype(q.dtype).itemsize
    o_itm = jnp.dtype(out_dtype).itemsize
    vmem_needed = (2 * (tq * Ghn + 2 * tk * Ghn) * itm     # q, k, v (double-buffered)
                   + 2 * tq * tk                            # int8 mask
                   + 2 * tq * Ghn * o_itm                   # output
                   + G * tq * (hn + 2) * 4                  # acc/m/l scratch
                   + 2 * tq * tk * 4)                       # score headroom
    flops = 4 * B * num_heads * S * S * hn                  # dense upper bound
    bytes_accessed = ((qp.size + kp.size + vp.size) * itm + mp.size
                      + B * Sq * H * o_itm)

    kernel = functools.partial(_flash_attention_kernel, scale=scale, G=G, hn=hn)

    ctx = pl.pallas_call(
        kernel,
        out_shape=jax.ShapeDtypeStruct((B, Sq, H), out_dtype),
        grid_spec=pltpu.PrefetchScalarGridSpec(
            num_scalar_prefetch=2,
            grid=(B, nG, nQ, nK),
            in_specs=[
                pl.BlockSpec((None, tq, Ghn), q_map),
                pl.BlockSpec((None, tk, Ghn), kv_map),
                pl.BlockSpec((None, tk, Ghn), kv_map),
                pl.BlockSpec((None, tq, tk), m_map),
            ],
            out_specs=pl.BlockSpec((None, tq, Ghn), o_map),
            scratch_shapes=[
                pltpu.VMEM((G, tq, 1), jnp.float32),   # running max
                pltpu.VMEM((G, tq, 1), jnp.float32),   # running denom
                pltpu.VMEM((G, tq, hn), jnp.float32),  # running numerator
            ]),
        compiler_params=_compiler_params(
            cfg, ("parallel", "parallel", "parallel", "arbitrary"), vmem_needed),
        cost_estimate=pl.CostEstimate(flops=int(flops),
                                      transcendentals=int(B * num_heads * S * S),
                                      bytes_accessed=int(bytes_accessed)),
    )(counts_flat, kvids_flat, qp, kp, vp, mp)
    return ctx[:, :S, :]


# ---------------------------------------------------------------------------
# One-time (outside jit) parameter prep: split the QKV weight per head into
# head-major Wq/Wk/Wv, cast MXU operands to the compute dtype, keep biases f32.
# ---------------------------------------------------------------------------
def prepare_params(params, *, num_heads, compute_dtype=None):
    H = params["wdense"].shape[0]
    hn = H // num_heads
    cdt = compute_dtype or params["wqkv"].dtype
    w = params["wqkv"].reshape(num_heads, 3, hn, H)
    b = params["bqkv"].reshape(num_heads, 3, hn)
    prep = {
        "wq": w[:, 0].reshape(H, H), "wk": w[:, 1].reshape(H, H),
        "wv": w[:, 2].reshape(H, H),
        "bq": b[:, 0].reshape(H), "bk": b[:, 1].reshape(H),
        "bv": b[:, 2].reshape(H),
        "wdense": params["wdense"], "bdense": params["bdense"],
        "w1": params["w1"], "b1": params["b1"],
        "w2": params["w2"], "b2": params["b2"],
    }
    for name in ("wq", "wk", "wv", "wdense", "w1", "w2"):
        prep[name] = prep[name].astype(cdt)
    for name in ("bq", "bk", "bv", "bdense", "b1", "b2"):
        prep[name] = prep[name].astype(jnp.float32)
    return prep


# ---------------------------------------------------------------------------
# Full TransformerLayer forward.
# ---------------------------------------------------------------------------
def transformer_layer_pallas(x, mask, prep, *, num_heads, cfg=None):
    cfg = cfg or get_hw_config()
    S, B, H = x.shape
    orig_dtype = x.dtype
    cdt = prep["wq"].dtype

    if mask.ndim == 4:
        if mask.shape[1] != 1:
            raise ValueError("expected a (B, 1, S, S) or (B, S, S) attention mask")
        mask = mask[:, 0]
    mask_i8 = (mask != 0).astype(jnp.int8)

    # (b, s) token order -- the module's own permute(1, 0, 2).  This is the
    # only wrapper-side activation transpose in the whole forward.
    xb = jnp.transpose(x, (1, 0, 2)).reshape(B * S, H).astype(cdt)

    # --- SparseAttention: QKV projection (3 head-major outputs) -------------
    q, k, v = fused_linear_pallas(
        xb, (prep["wq"], prep["wk"], prep["wv"]),
        (prep["bq"], prep["bk"], prep["bv"]), cfg=cfg, out_dtype=cdt)

    ctx = attention_pallas(q.reshape(B, S, H), k.reshape(B, S, H),
                           v.reshape(B, S, H), mask_i8,
                           num_heads=num_heads, cfg=cfg, out_dtype=cdt)  # (B,S,H)

    (attn_out,) = fused_linear_pallas(
        ctx.reshape(B * S, H), (prep["wdense"],), (prep["bdense"],),
        cfg=cfg, out_dtype=cdt)

    # --- MLP -----------------------------------------------------------------
    mlp_out = mlp_pallas(attn_out, prep["w1"], prep["b1"], prep["w2"], prep["b2"],
                         cfg=cfg, out_dtype=orig_dtype)          # (B*S, H)

    # MLP.forward's reshape(*output_shape): (b, s)-ordered data relabeled into
    # the original (S, B, H) shape -- a free reshape, no transpose.
    return mlp_out.reshape(S, B, H)


# ---------------------------------------------------------------------------
# Pure-JAX reference (mirrors the PyTorch module op-for-op, original params).
# ---------------------------------------------------------------------------
def transformer_layer_reference(x, mask, params, *, num_heads):
    S, B, H = x.shape
    hn = H // num_heads
    if mask.ndim == 4:
        mask = mask.reshape(mask.shape[0], mask.shape[2], mask.shape[3])
    keep = mask != 0

    hs = jnp.transpose(x, (1, 0, 2))                                # (B,S,H)
    mixed = hs @ params["wqkv"].T + params["bqkv"]                  # (B,S,3H)
    mixed = mixed.reshape(B, S, num_heads, 3 * hn)
    q, k, v = mixed[..., :hn], mixed[..., hn:2 * hn], mixed[..., 2 * hn:]
    q = jnp.transpose(q, (0, 2, 1, 3))
    k = jnp.transpose(k, (0, 2, 1, 3))
    v = jnp.transpose(v, (0, 2, 1, 3))

    scale = 1.0 / math.sqrt(hn)
    scores = jnp.einsum("bnqd,bnkd->bnqk", q, k) * scale
    km = keep[:, None, :, :]
    scores = jnp.where(km, scores, -1e30)
    row_max = jnp.max(scores, axis=-1, keepdims=True)
    p = jnp.where(km, jnp.exp(scores - row_max), 0.0)
    denom = jnp.sum(p, axis=-1, keepdims=True)
    denom = jnp.where(denom == 0.0, 1.0, denom)
    w = p / denom
    ctx = jnp.einsum("bnqk,bnkd->bnqd", w, v)                       # (B,n,S,hn)
    ctx = jnp.transpose(ctx, (2, 0, 1, 3)).reshape(S, B, H)
    attn_out = ctx @ params["wdense"].T + params["bdense"]          # (S,B,H)

    hp = jnp.transpose(attn_out, (1, 0, 2))                         # (B,S,H)
    h1 = hp @ params["w1"].T + params["b1"]
    y = h1 @ params["w2"].T + params["b2"]
    return y.reshape(S, B, H)


if __name__ == "__main__":
    S, B, H, NH, F = 8, 2, 32, 4, 128
    key = jax.random.PRNGKey(0)
    keys = jax.random.split(key, 10)

    def linear_init(kw, kb, out_f, in_f):
        bound = 1.0 / math.sqrt(in_f)
        w = jax.random.uniform(kw, (out_f, in_f), jnp.float32, -bound, bound)
        b = jax.random.uniform(kb, (out_f,), jnp.float32, -bound, bound)
        return w, b

    params = {}
    params["wqkv"], params["bqkv"] = linear_init(keys[0], keys[1], 3 * H, H)
    params["wdense"], params["bdense"] = linear_init(keys[2], keys[3], H, H)
    params["w1"], params["b1"] = linear_init(keys[4], keys[5], F, H)
    params["w2"], params["b2"] = linear_init(keys[6], keys[7], H, F)

    x = jax.random.normal(keys[8], (S, B, H), jnp.float32)
    # Banded-causal sparsity pattern (every row keeps at least the diagonal).
    i = jnp.arange(S)[:, None]
    j = jnp.arange(S)[None, :]
    band = ((j <= i) & (i - j < 5)).astype(jnp.float32)
    mask = jnp.broadcast_to(band, (B, 1, S, S))

    ref = transformer_layer_reference(x, mask, params, num_heads=NH)

    # f32 path (exact module semantics).  Weight prep (QKV split + casts) is
    # done once, outside the jitted forward.
    prep_f32 = jax.tree_util.tree_map(jax.block_until_ready,
                                      prepare_params(params, num_heads=NH))
    layer_f32 = jax.jit(functools.partial(transformer_layer_pallas, num_heads=NH))
    out = jax.block_until_ready(layer_f32(x, mask, prep_f32))
    assert out.shape == (S, B, H)
    assert jnp.allclose(out, ref, atol=1e-2, rtol=1e-2), (
        "f32 kernel mismatch vs reference: max abs diff = "
        f"{float(jnp.max(jnp.abs(out - ref)))}")

    # bf16 MXU-operand path: f32 accumulation, looser tolerance.
    prep_bf16 = jax.tree_util.tree_map(
        jax.block_until_ready,
        prepare_params(params, num_heads=NH, compute_dtype=jnp.bfloat16))
    layer_bf16 = jax.jit(functools.partial(transformer_layer_pallas, num_heads=NH))
    out_bf16 = jax.block_until_ready(layer_bf16(x, mask, prep_bf16))
    assert jnp.allclose(out_bf16.astype(jnp.float32), ref, atol=5e-2, rtol=5e-2), (
        "bf16 kernel mismatch vs reference: max abs diff = "
        f"{float(jnp.max(jnp.abs(out_bf16.astype(jnp.float32) - ref)))}")

    print("KERNEL_OK")
</pallas_src>

<mosaic_0001>
module attributes {stable_mosaic.version = 11 : i64} {
  func.func @_fused_linear_kernel(%arg0: i32, %arg1: i32, %arg2: i32, %arg3: memref<16x32xf32, #tpu.memory_space<vmem>>, %arg4: memref<32x32xf32, #tpu.memory_space<vmem>>, %arg5: memref<32x32xf32, #tpu.memory_space<vmem>>, %arg6: memref<32x32xf32, #tpu.memory_space<vmem>>, %arg7: memref<1x32xf32, #tpu.memory_space<vmem>>, %arg8: memref<1x32xf32, #tpu.memory_space<vmem>>, %arg9: memref<1x32xf32, #tpu.memory_space<vmem>>, %arg10: memref<16x32xf32, #tpu.memory_space<vmem>>, %arg11: memref<16x32xf32, #tpu.memory_space<vmem>>, %arg12: memref<16x32xf32, #tpu.memory_space<vmem>>, %arg13: memref<16x32xf32, #tpu.memory_space<vmem>>, %arg14: memref<16x32xf32, #tpu.memory_space<vmem>>, %arg15: memref<16x32xf32, #tpu.memory_space<vmem>>) attributes {dimension_semantics = [#tpu.dimension_semantics<parallel>, #tpu.dimension_semantics<parallel>, #tpu.dimension_semantics<arbitrary>], iteration_bounds = array<i64: 1, 1, 1>, scalar_prefetch = 0 : i64, scratch_operands = 3 : i64, tpu.core_type = #tpu.core_type<tc>, window_params = [{transform_indices = @transform_0, window_bounds = array<i64: 16, 32>}, {transform_indices = @transform_1, window_bounds = array<i64: 32, 32>}, {transform_indices = @transform_2, window_bounds = array<i64: 32, 32>}, {transform_indices = @transform_3, window_bounds = array<i64: 32, 32>}, {transform_indices = @transform_4, window_bounds = array<i64: 1, 32>}, {transform_indices = @transform_5, window_bounds = array<i64: 1, 32>}, {transform_indices = @transform_6, window_bounds = array<i64: 1, 32>}, {transform_indices = @transform_7, window_bounds = array<i64: 16, 32>}, {transform_indices = @transform_8, window_bounds = array<i64: 16, 32>}, {transform_indices = @transform_9, window_bounds = array<i64: 16, 32>}]} {
    %c0_i32 = arith.constant 0 : i32
    %0 = arith.cmpi eq, %arg2, %c0_i32 : i32
    %1 = arith.extui %0 : i1 to i32
    %c0_i32_0 = arith.constant 0 : i32
    %2 = arith.cmpi ne, %1, %c0_i32_0 : i32
    scf.if %2 {
      %cst_24 = arith.constant 0.000000e+00 : f32
      %22 = vector.broadcast %cst_24 : f32 to vector<16x32xf32>
      %c0_25 = arith.constant 0 : index
      %c0_26 = arith.constant 0 : index
      %23 = vector.load %arg13[%c0_25, %c0_26] : memref<16x32xf32, #tpu.memory_space<vmem>>, vector<16x32xf32>
      tpu.vector_store %arg13[%c0_25, %c0_26], %22 {strides = array<i32>} : memref<16x32xf32, #tpu.memory_space<vmem>>, vector<16x32xf32>,
      %cst_27 = arith.constant 0.000000e+00 : f32
      %24 = vector.broadcast %cst_27 : f32 to vector<16x32xf32>
      %c0_28 = arith.constant 0 : index
      %c0_29 = arith.constant 0 : index
      %25 = vector.load %arg14[%c0_28, %c0_29] : memref<16x32xf32, #tpu.memory_space<vmem>>, vector<16x32xf32>
      tpu.vector_store %arg14[%c0_28, %c0_29], %24 {strides = array<i32>} : memref<16x32xf32, #tpu.memory_space<vmem>>, vector<16x32xf32>,
      %cst_30 = arith.constant 0.000000e+00 : f32
      %26 = vector.broadcast %cst_30 : f32 to vector<16x32xf32>
      %c0_31 = arith.constant 0 : index
      %c0_32 = arith.constant 0 : index
      %27 = vector.load %arg15[%c0_31, %c0_32] : memref<16x32xf32, #tpu.memory_space<vmem>>, vector<16x32xf32>
      tpu.vector_store %arg15[%c0_31, %c0_32], %26 {strides = array<i32>} : memref<16x32xf32, #tpu.memory_space<vmem>>, vector<16x32xf32>,
    } else {
    }
    %c0 = arith.constant 0 : index
    %c0_1 = arith.constant 0 : index
    %3 = vector.load %arg3[%c0, %c0_1] : memref<16x32xf32, #tpu.memory_space<vmem>>, vector<16x32xf32>
    %c0_2 = arith.constant 0 : index
    %c0_3 = arith.constant 0 : index
    %4 = vector.load %arg13[%c0_2, %c0_3] : memref<16x32xf32, #tpu.memory_space<vmem>>, vector<16x32xf32>
    %c0_4 = arith.constant 0 : index
    %c0_5 = arith.constant 0 : index
    %5 = vector.load %arg4[%c0_4, %c0_5] : memref<32x32xf32, #tpu.memory_space<vmem>>, vector<32x32xf32>
    %cst = arith.constant dense<0.000000e+00> : vector<16x32xf32>
    %6 = tpu.matmul %3, %5, %cst {dimension_numbers = #tpu.dot_dimension_numbers<[1], [1], [0], [0], [0, 0, 1, 0], [], []>} : vector<16x32xf32>, vector<32x32xf32>, vector<16x32xf32> -> vector<16x32xf32>
    %7 = arith.addf %4, %6 : vector<16x32xf32>
    %c0_6 = arith.constant 0 : index
    %c0_7 = arith.constant 0 : index
    %8 = vector.load %arg13[%c0_6, %c0_7] : memref<16x32xf32, #tpu.memory_space<vmem>>, vector<16x32xf32>
    tpu.vector_store %arg13[%c0_6, %c0_7], %7 {strides = array<i32>} : memref<16x32xf32, #tpu.memory_space<vmem>>, vector<16x32xf32>,
    %c0_8 = arith.constant 0 : index
    %c0_9 = arith.constant 0 : index
    %9 = vector.load %arg14[%c0_8, %c0_9] : memref<16x32xf32, #tpu.memory_space<vmem>>, vector<16x32xf32>
    %c0_10 = arith.constant 0 : index
    %c0_11 = arith.constant 0 : index
    %10 = vector.load %arg5[%c0_10, %c0_11] : memref<32x32xf32, #tpu.memory_space<vmem>>, vector<32x32xf32>
    %cst_12 = arith.constant dense<0.000000e+00> : vector<16x32xf32>
    %11 = tpu.matmul %3, %10, %cst_12 {dimension_numbers = #tpu.dot_dimension_numbers<[1], [1], [0], [0], [0, 0, 1, 0], [], []>} : vector<16x32xf32>, vector<32x32xf32>, vector<16x32xf32> -> vector<16x32xf32>
    %12 = arith.addf %9, %11 : vector<16x32xf32>
    %c0_13 = arith.constant 0 : index
    %c0_14 = arith.constant 0 : index
    %13 = vector.load %arg14[%c0_13, %c0_14] : memref<16x32xf32, #tpu.memory_space<vmem>>, vector<16x32xf32>
    tpu.vector_store %arg14[%c0_13, %c0_14], %12 {strides = array<i32>} : memref<16x32xf32, #tpu.memory_space<vmem>>, vector<16x32xf32>,
    %c0_15 = arith.constant 0 : index
    %c0_16 = arith.constant 0 : index
    %14 = vector.load %arg15[%c0_15, %c0_16] : memref<16x32xf32, #tpu.memory_space<vmem>>, vector<16x32xf32>
    %c0_17 = arith.constant 0 : index
    %c0_18 = arith.constant 0 : index
    %15 = vector.load %arg6[%c0_17, %c0_18] : memref<32x32xf32, #tpu.memory_space<vmem>>, vector<32x32xf32>
    %cst_19 = arith.constant dense<0.000000e+00> : vector<16x32xf32>
    %16 = tpu.matmul %3, %15, %cst_19 {dimension_numbers = #tpu.dot_dimension_numbers<[1], [1], [0], [0], [0, 0, 1, 0], [], []>} : vector<16x32xf32>, vector<32x32xf32>, vector<16x32xf32> -> vector<16x32xf32>
    %17 = arith.addf %14, %16 : vector<16x32xf32>
    %c0_20 = arith.constant 0 : index
    %c0_21 = arith.constant 0 : index
    %18 = vector.load %arg15[%c0_20, %c0_21] : memref<16x32xf32, #tpu.memory_space<vmem>>, vector<16x32xf32>
    tpu.vector_store %arg15[%c0_20, %c0_21], %17 {strides = array<i32>} : memref<16x32xf32, #tpu.memory_space<vmem>>, vector<16x32xf32>,
    %c0_i32_22 = arith.constant 0 : i32
    %19 = arith.cmpi eq, %arg2, %c0_i32_22 : i32
    %20 = arith.extui %19 : i1 to i32
    %c0_i32_23 = arith.constant 0 : i32
    %21 = arith.cmpi ne, %20, %c0_i32_23 : i32
    scf.if %21 {
      %c0_24 = arith.constant 0 : index
      %c0_25 = arith.constant 0 : index
      %22 = vector.load %arg13[%c0_24, %c0_25] : memref<16x32xf32, #tpu.memory_space<vmem>>, vector<16x32xf32>
      %c0_26 = arith.constant 0 : index
      %c0_27 = arith.constant 0 : index
      %23 = vector.load %arg7[%c0_26, %c0_27] : memref<1x32xf32, #tpu.memory_space<vmem>>, vector<1x32xf32>
      %24 = vector.broadcast %23 : vector<1x32xf32> to vector<16x32xf32>
      %25 = arith.addf %22, %24 : vector<16x32xf32>
      %c0_28 = arith.constant 0 : index
      %c0_29 = arith.constant 0 : index
      %26 = vector.load %arg10[%c0_28, %c0_29] : memref<16x32xf32, #tpu.memory_space<vmem>>, vector<16x32xf32>
      tpu.vector_store %arg10[%c0_28, %c0_29], %25 {strides = array<i32>} : memref<16x32xf32, #tpu.memory_space<vmem>>, vector<16x32xf32>,
      %c0_30 = arith.constant 0 : index
      %c0_31 = arith.constant 0 : index
      %27 = vector.load %arg14[%c0_30, %c0_31] : memref<16x32xf32, #tpu.memory_space<vmem>>, vector<16x32xf32>
      %c0_32 = arith.constant 0 : index
      %c0_33 = arith.constant 0 : index
      %28 = vector.load %arg8[%c0_32, %c0_33] : memref<1x32xf32, #tpu.memory_space<vmem>>, vector<1x32xf32>
      %29 = vector.broadcast %28 : vector<1x32xf32> to vector<16x32xf32>
      %30 = arith.addf %27, %29 : vector<16x32xf32>
      %c0_34 = arith.constant 0 : index
      %c0_35 = arith.constant 0 : index
      %31 = vector.load %arg11[%c0_34, %c0_35] : memref<16x32xf32, #tpu.memory_space<vmem>>, vector<16x32xf32>
      tpu.vector_store %arg11[%c0_34, %c0_35], %30 {strides = array<i32>} : memref<16x32xf32, #tpu.memory_space<vmem>>, vector<16x32xf32>,
      %c0_36 = arith.constant 0 : index
      %c0_37 = arith.constant 0 : index
      %32 = vector.load %arg15[%c0_36, %c0_37] : memref<16x32xf32, #tpu.memory_space<vmem>>, vector<16x32xf32>
      %c0_38 = arith.constant 0 : index
      %c0_39 = arith.constant 0 : index
      %33 = vector.load %arg9[%c0_38, %c0_39] : memref<1x32xf32, #tpu.memory_space<vmem>>, vector<1x32xf32>
      %34 = vector.broadcast %33 : vector<1x32xf32> to vector<16x32xf32>
      %35 = arith.addf %32, %34 : vector<16x32xf32>
      %c0_40 = arith.constant 0 : index
      %c0_41 = arith.constant 0 : index
      %36 = vector.load %arg12[%c0_40, %c0_41] : memref<16x32xf32, #tpu.memory_space<vmem>>, vector<16x32xf32>
      tpu.vector_store %arg12[%c0_40, %c0_41], %35 {strides = array<i32>} : memref<16x32xf32, #tpu.memory_space<vmem>>, vector<16x32xf32>,
    } else {
    }
    return
  }
  func.func @transform_0(%arg0: i32, %arg1: i32, %arg2: i32) -> (i32, i32) {
    %c0_i32 = arith.constant 0 : i32
    return %arg0, %arg2 : i32, i32
  }
  func.func @transform_1(%arg0: i32, %arg1: i32, %arg2: i32) -> (i32, i32) {
    %c0_i32 = arith.constant 0 : i32
    return %arg1, %arg2 : i32, i32
  }
  func.func @transform_2(%arg0: i32, %arg1: i32, %arg2: i32) -> (i32, i32) {
    %c0_i32 = arith.constant 0 : i32
    return %arg1, %arg2 : i32, i32
  }
  func.func @transform_3(%arg0: i32, %arg1: i32, %arg2: i32) -> (i32, i32) {
    %c0_i32 = arith.constant 0 : i32
    return %arg1, %arg2 : i32, i32
  }
  func.func @transform_4(%arg0: i32, %arg1: i32, %arg2: i32) -> (i32, i32) {
    %c0_i32 = arith.constant 0 : i32
    %c0_i32_0 = arith.constant 0 : i32
    return %c0_i32, %arg1 : i32, i32
  }
  func.func @transform_5(%arg0: i32, %arg1: i32, %arg2: i32) -> (i32, i32) {
    %c0_i32 = arith.constant 0 : i32
    %c0_i32_0 = arith.constant 0 : i32
    return %c0_i32, %arg1 : i32, i32
  }
  func.func @transform_6(%arg0: i32, %arg1: i32, %arg2: i32) -> (i32, i32) {
    %c0_i32 = arith.constant 0 : i32
    %c0_i32_0 = arith.constant 0 : i32
    return %c0_i32, %arg1 : i32, i32
  }
  func.func @transform_7(%arg0: i32, %arg1: i32, %arg2: i32) -> (i32, i32) {
    %c0_i32 = arith.constant 0 : i32
    return %arg0, %arg1 : i32, i32
  }
  func.func @transform_8(%arg0: i32, %arg1: i32, %arg2: i32) -> (i32, i32) {
    %c0_i32 = arith.constant 0 : i32
    return %arg0, %arg1 : i32, i32
  }
  func.func @transform_9(%arg0: i32, %arg1: i32, %arg2: i32) -> (i32, i32) {
    %c0_i32 = arith.constant 0 : i32
    return %arg0, %arg1 : i32, i32
  }
}

module attributes {stable_mosaic.version = 11 : i64} {
  func.func @_fused_linear_kernel(%arg0: i32, %arg1: i32, %arg2: i32, %arg3: memref<16x32xf32, #tpu.memory_space<vmem>>, %arg4: memref<32x32xf32, #tpu.memory_space<vmem>>, %arg5: memref<1x32xf32, #tpu.memory_space<vmem>>, %arg6: memref<16x32xf32, #tpu.memory_space<vmem>>, %arg7: memref<16x32xf32, #tpu.memory_space<vmem>>) attributes {dimension_semantics = [#tpu.dimension_semantics<parallel>, #tpu.dimension_semantics<parallel>, #tpu.dimension_semantics<arbitrary>], iteration_bounds = array<i64: 1, 1, 1>, scalar_prefetch = 0 : i64, scratch_operands = 1 : i64, tpu.core_type = #tpu.core_type<tc>, window_params = [{transform_indices = @transform_0, window_bounds = array<i64: 16, 32>}, {transform_indices = @transform_1, window_bounds = array<i64: 32, 32>}, {transform_indices = @transform_2, window_bounds = array<i64: 1, 32>}, {transform_indices = @transform_3, window_bounds = array<i64: 16, 32>}]} {
    %c0_i32 = arith.constant 0 : i32
    %0 = arith.cmpi eq, %arg2, %c0_i32 : i32
    %1 = arith.extui %0 : i1 to i32
    %c0_i32_0 = arith.constant 0 : i32
    %2 = arith.cmpi ne, %1, %c0_i32_0 : i32
    scf.if %2 {
      %cst_10 = arith.constant 0.000000e+00 : f32
      %12 = vector.broadcast %cst_10 : f32 to vector<16x32xf32>
      %c0_11 = arith.constant 0 : index
      %c0_12 = arith.constant 0 : index
      %13 = vector.load %arg7[%c0_11, %c0_12] : memref<16x32xf32, #tpu.memory_space<vmem>>, vector<16x32xf32>
      tpu.vector_store %arg7[%c0_11, %c0_12], %12 {strides = array<i32>} : memref<16x32xf32, #tpu.memory_space<vmem>>, vector<16x32xf32>,
    } else {
    }
    %c0 = arith.constant 0 : index
    %c0_1 = arith.constant 0 : index
    %3 = vector.load %arg3[%c0, %c0_1] : memref<16x32xf32, #tpu.memory_space<vmem>>, vector<16x32xf32>
    %c0_2 = arith.constant 0 : index
    %c0_3 = arith.constant 0 : index
    %4 = vector.load %arg7[%c0_2, %c0_3] : memref<16x32xf32, #tpu.memory_space<vmem>>, vector<16x32xf32>
    %c0_4 = arith.constant 0 : index
    %c0_5 = arith.constant 0 : index
    %5 = vector.load %arg4[%c0_4, %c0_5] : memref<32x32xf32, #tpu.memory_space<vmem>>, vector<32x32xf32>
    %cst = arith.constant dense<0.000000e+00> : vector<16x32xf32>
    %6 = tpu.matmul %3, %5, %cst {dimension_numbers = #tpu.dot_dimension_numbers<[1], [1], [0], [0], [0, 0, 1, 0], [], []>} : vector<16x32xf32>, vector<32x32xf32>, vector<16x32xf32> -> vector<16x32xf32>
    %7 = arith.addf %4, %6 : vector<16x32xf32>
    %c0_6 = arith.constant 0 : index
    %c0_7 = arith.constant 0 : index
    %8 = vector.load %arg7[%c0_6, %c0_7] : memref<16x32xf32, #tpu.memory_space<vmem>>, vector<16x32xf32>
    tpu.vector_store %arg7[%c0_6, %c0_7], %7 {strides = array<i32>} : memref<16x32xf32, #tpu.memory_space<vmem>>, vector<16x32xf32>,
    %c0_i32_8 = arith.constant 0 : i32
    %9 = arith.cmpi eq, %arg2, %c0_i32_8 : i32
    %10 = arith.extui %9 : i1 to i32
    %c0_i32_9 = arith.constant 0 : i32
    %11 = arith.cmpi ne, %10, %c0_i32_9 : i32
    scf.if %11 {
      %c0_10 = arith.constant 0 : index
      %c0_11 = arith.constant 0 : index
      %12 = vector.load %arg7[%c0_10, %c0_11] : memref<16x32xf32, #tpu.memory_space<vmem>>, vector<16x32xf32>
      %c0_12 = arith.constant 0 : index
      %c0_13 = arith.constant 0 : index
      %13 = vector.load %arg5[%c0_12, %c0_13] : memref<1x32xf32, #tpu.memory_space<vmem>>, vector<1x32xf32>
      %14 = vector.broadcast %13 : vector<1x32xf32> to vector<16x32xf32>
      %15 = arith.addf %12, %14 : vector<16x32xf32>
      %c0_14 = arith.constant 0 : index
      %c0_15 = arith.constant 0 : index
      %16 = vector.load %arg6[%c0_14, %c0_15] : memref<16x32xf32, #tpu.memory_space<vmem>>, vector<16x32xf32>
      tpu.vector_store %arg6[%c0_14, %c0_15], %15 {strides = array<i32>} : memref<16x32xf32, #tpu.memory_space<vmem>>, vector<16x32xf32>,
    } else {
    }
    return
  }
  func.func @transform_0(%arg0: i32, %arg1: i32, %arg2: i32) -> (i32, i32) {
    %c0_i32 = arith.constant 0 : i32
    return %arg0, %arg2 : i32, i32
  }
  func.func @transform_1(%arg0: i32, %arg1: i32, %arg2: i32) -> (i32, i32) {
    %c0_i32 = arith.constant 0 : i32
    return %arg1, %arg2 : i32, i32
  }
  func.func @transform_2(%arg0: i32, %arg1: i32, %arg2: i32) -> (i32, i32) {
    %c0_i32 = arith.constant 0 : i32
    %c0_i32_0 = arith.constant 0 : i32
    return %c0_i32, %arg1 : i32, i32
  }
  func.func @transform_3(%arg0: i32, %arg1: i32, %arg2: i32) -> (i32, i32) {
    %c0_i32 = arith.constant 0 : i32
    return %arg0, %arg1 : i32, i32
  }
}

module attributes {stable_mosaic.version = 11 : i64} {
  func.func @_flash_attention_kernel(%arg0: i32, %arg1: i32, %arg2: i32, %arg3: i32, %arg4: memref<2xi32, #tpu.memory_space<smem>>, %arg5: memref<2xi32, #tpu.memory_space<smem>>, %arg6: memref<1x8x32xf32, #tpu.memory_space<vmem>>, %arg7: memref<1x8x32xf32, #tpu.memory_space<vmem>>, %arg8: memref<1x8x32xf32, #tpu.memory_space<vmem>>, %arg9: memref<1x8x8xi8, #tpu.memory_space<vmem>>, %arg10: memref<1x8x32xf32, #tpu.memory_space<vmem>>, %arg11: memref<4x8x1xf32, #tpu.memory_space<vmem>>, %arg12: memref<4x8x1xf32, #tpu.memory_space<vmem>>, %arg13: memref<4x8x8xf32, #tpu.memory_space<vmem>>) attributes {dimension_semantics = [#tpu.dimension_semantics<parallel>, #tpu.dimension_semantics<parallel>, #tpu.dimension_semantics<parallel>, #tpu.dimension_semantics<arbitrary>], iteration_bounds = array<i64: 2, 1, 1, 1>, scalar_prefetch = 2 : i64, scratch_operands = 3 : i64, tpu.core_type = #tpu.core_type<tc>, window_params = [{transform_indices = @transform_0, window_bounds = array<i64: 1, 8, 32>}, {transform_indices = @transform_1, window_bounds = array<i64: 1, 8, 32>}, {transform_indices = @transform_2, window_bounds = array<i64: 1, 8, 32>}, {transform_indices = @transform_3, window_bounds = array<i64: 1, 8, 8>}, {transform_indices = @transform_4, window_bounds = array<i64: 1, 8, 32>}]} {
    %c0_i32 = arith.constant 0 : i32
    %0 = arith.cmpi eq, %arg3, %c0_i32 : i32
    %1 = arith.extui %0 : i1 to i32
    %c0_i32_0 = arith.constant 0 : i32
    %2 = arith.cmpi ne, %1, %c0_i32_0 : i32
    scf.if %2 {
      %cst = arith.constant -1.000000e+30 : f32
      %13 = vector.broadcast %cst : f32 to vector<4x8x1xf32>
      %c0 = arith.constant 0 : index
      %c0_4 = arith.constant 0 : index
      %c0_5 = arith.constant 0 : index
      %14 = vector.load %arg11[%c0, %c0_4, %c0_5] : memref<4x8x1xf32, #tpu.memory_space<vmem>>, vector<4x8x1xf32>
      tpu.vector_store %arg11[%c0, %c0_4, %c0_5], %13 {strides = array<i32>} : memref<4x8x1xf32, #tpu.memory_space<vmem>>, vector<4x8x1xf32>,
      %cst_6 = arith.constant 0.000000e+00 : f32
      %15 = vector.broadcast %cst_6 : f32 to vector<4x8x1xf32>
      %c0_7 = arith.constant 0 : index
      %c0_8 = arith.constant 0 : index
      %c0_9 = arith.constant 0 : index
      %16 = vector.load %arg12[%c0_7, %c0_8, %c0_9] : memref<4x8x1xf32, #tpu.memory_space<vmem>>, vector<4x8x1xf32>
      tpu.vector_store %arg12[%c0_7, %c0_8, %c0_9], %15 {strides = array<i32>} : memref<4x8x1xf32, #tpu.memory_space<vmem>>, vector<4x8x1xf32>,
      %cst_10 = arith.constant 0.000000e+00 : f32
      %17 = vector.broadcast %cst_10 : f32 to vector<4x8x8xf32>
      %c0_11 = arith.constant 0 : index
      %c0_12 = arith.constant 0 : index
      %c0_13 = arith.constant 0 : index
      %18 = vector.load %arg13[%c0_11, %c0_12, %c0_13] : memref<4x8x8xf32, #tpu.memory_space<vmem>>, vector<4x8x8xf32>
      tpu.vector_store %arg13[%c0_11, %c0_12, %c0_13], %17 {strides = array<i32>} : memref<4x8x8xf32, #tpu.memory_space<vmem>>, vector<4x8x8xf32>,
    } else {
    }
    %c1_i32 = arith.constant 1 : i32
    %3 = arith.muli %arg0, %c1_i32 : i32
    %4 = arith.addi %3, %arg2 : i32
    %5 = arith.index_cast %4 : i32 to index
    %6 = memref.load %arg4[%5] : memref<2xi32, #tpu.memory_space<smem>>
    %7 = arith.cmpi slt, %arg3, %6 : i32
    %8 = arith.extui %7 : i1 to i32
    %c0_i32_1 = arith.constant 0 : i32
    %9 = arith.cmpi ne, %8, %c0_i32_1 : i32
    scf.if %9 {
      %c0 = arith.constant 0 : index
      %c0_4 = arith.constant 0 : index
      %c0_5 = arith.constant 0 : index
      %13 = vector.load %arg9[%c0, %c0_4, %c0_5] : memref<1x8x8xi8, #tpu.memory_space<vmem>>, vector<1x8x8xi8>
      %14 = vector.shape_cast %13 : vector<1x8x8xi8> to vector<8x8xi8>
      %c0_i8 = arith.constant 0 : i8
      %15 = vector.broadcast %c0_i8 : i8 to vector<8x8xi8>
      %16 = arith.cmpi ne, %14, %15 : vector<8x8xi8>
      %c0_6 = arith.constant 0 : index
      %c0_7 = arith.constant 0 : index
      %c0_8 = arith.constant 0 : index
      %17 = vector.load %arg6[%c0_6, %c0_7, %c0_8] : memref<1x8x32xf32, #tpu.memory_space<vmem>>, vector<1x8x8xf32>
      %18 = vector.shape_cast %17 : vector<1x8x8xf32> to vector<8x8xf32>
      %c0_9 = arith.constant 0 : index
      %c0_10 = arith.constant 0 : index
      %c0_11 = arith.constant 0 : index
      %19 = vector.load %arg7[%c0_9, %c0_10, %c0_11] : memref<1x8x32xf32, #tpu.memory_space<vmem>>, vector<1x8x8xf32>
      %20 = vector.shape_cast %19 : vector<1x8x8xf32> to vector<8x8xf32>
      %cst = arith.constant dense<0.000000e+00> : vector<8x8xf32>
      %21 = tpu.matmul %18, %20, %cst {dimension_numbers = #tpu.dot_dimension_numbers<[1], [1], [0], [0], [0, 0, 1, 0], [], []>} : vector<8x8xf32>, vector<8x8xf32>, vector<8x8xf32> -> vector<8x8xf32>
      %cst_12 = arith.constant 0.353553385 : f32
      %22 = vector.broadcast %cst_12 : f32 to vector<8x8xf32>
      %23 = arith.mulf %21, %22 : vector<8x8xf32>
      %cst_13 = arith.constant -1.000000e+30 : f32
      %24 = vector.broadcast %cst_13 : f32 to vector<8x8xf32>
      %25 = arith.select %16, %23, %24 : vector<8x8xi1>, vector<8x8xf32>
      %c0_14 = arith.constant 0 : index
      %c0_15 = arith.constant 0 : index
      %c0_16 = arith.constant 0 : index
      %26 = vector.load %arg11[%c0_14, %c0_15, %c0_16] : memref<4x8x1xf32, #tpu.memory_space<vmem>>, vector<1x8x1xf32>
      %27 = vector.shape_cast %26 : vector<1x8x1xf32> to vector<8x1xf32>
      %cst_17 = arith.constant dense<0xFF800000> : vector<8xf32>
      %28 = vector.multi_reduction <maximumf>, %25, %cst_17 [1] : vector<8x8xf32> to vector<8xf32>
      %29 = vector.shape_cast %28 : vector<8xf32> to vector<8x1xf32>
      %30 = arith.maximumf %27, %29 : vector<8x1xf32>
      %31 = arith.subf %27, %30 : vector<8x1xf32>
      %32 = math.exp %31 : vector<8x1xf32>
      %33 = vector.broadcast %30 : vector<8x1xf32> to vector<8x8xf32>
      %34 = arith.subf %25, %33 : vector<8x8xf32>
      %35 = math.exp %34 : vector<8x8xf32>
      %cst_18 = arith.constant 0.000000e+00 : f32
      %36 = vector.broadcast %cst_18 : f32 to vector<8x8xf32>
      %37 = arith.select %16, %35, %36 : vector<8x8xi1>, vector<8x8xf32>
      %c0_19 = arith.constant 0 : index
      %c0_20 = arith.constant 0 : index
      %c0_21 = arith.constant 0 : index
      %38 = vector.load %arg12[%c0_19, %c0_20, %c0_21] : memref<4x8x1xf32, #tpu.memory_space<vmem>>, vector<1x8x1xf32>
      %39 = vector.shape_cast %38 : vector<1x8x1xf32> to vector<8x1xf32>
      %40 = arith.mulf %32, %39 : vector<8x1xf32>
      %cst_22 = arith.constant dense<0.000000e+00> : vector<8xf32>
      %41 = vector.multi_reduction <add>, %37, %cst_22 [1] : vector<8x8xf32> to vector<8xf32>
      %42 = vector.shape_cast %41 : vector<8xf32> to vector<8x1xf32>
      %43 = arith.addf %40, %42 : vector<8x1xf32>
      %c0_23 = arith.constant 0 : index
      %c0_24 = arith.constant 0 : index
      %c0_25 = arith.constant 0 : index
      %44 = vector.load %arg12[%c0_23, %c0_24, %c0_25] : memref<4x8x1xf32, #tpu.memory_space<vmem>>, vector<1x8x1xf32>
      %45 = vector.shape_cast %44 : vector<1x8x1xf32> to vector<8x1xf32>
      %46 = vector.shape_cast %43 : vector<8x1xf32> to vector<1x8x1xf32>
      tpu.vector_store %arg12[%c0_23, %c0_24, %c0_25], %46 {strides = array<i32>} : memref<4x8x1xf32, #tpu.memory_space<vmem>>, vector<1x8x1xf32>,
      %c0_26 = arith.constant 0 : index
      %c0_27 = arith.constant 0 : index
      %c0_28 = arith.constant 0 : index
      %47 = vector.load %arg8[%c0_26, %c0_27, %c0_28] : memref<1x8x32xf32, #tpu.memory_space<vmem>>, vector<1x8x8xf32>
      %48 = vector.shape_cast %47 : vector<1x8x8xf32> to vector<8x8xf32>
      %cst_29 = arith.constant dense<0.000000e+00> : vector<8x8xf32>
      %49 = tpu.matmul %37, %48, %cst_29 {dimension_numbers = #tpu.dot_dimension_numbers<[1], [0], [0], [1], [0, 0, 1, 1], [], []>} : vector<8x8xf32>, vector<8x8xf32>, vector<8x8xf32> -> vector<8x8xf32>
      %c0_30 = arith.constant 0 : index
      %c0_31 = arith.constant 0 : index
      %c0_32 = arith.constant 0 : index
      %50 = vector.load %arg13[%c0_30, %c0_31, %c0_32] : memref<4x8x8xf32, #tpu.memory_space<vmem>>, vector<1x8x8xf32>
      %51 = vector.shape_cast %50 : vector<1x8x8xf32> to vector<8x8xf32>
      %52 = vector.broadcast %32 : vector<8x1xf32> to vector<8x8xf32>
      %53 = arith.mulf %52, %51 : vector<8x8xf32>
      %54 = arith.addf %53, %49 : vector<8x8xf32>
      %c0_33 = arith.constant 0 : index
      %c0_34 = arith.constant 0 : index
      %c0_35 = arith.constant 0 : index
      %55 = vector.load %arg13[%c0_33, %c0_34, %c0_35] : memref<4x8x8xf32, #tpu.memory_space<vmem>>, vector<1x8x8xf32>
      %56 = vector.shape_cast %55 : vector<1x8x8xf32> to vector<8x8xf32>
      %57 = vector.shape_cast %54 : vector<8x8xf32> to vector<1x8x8xf32>
      tpu.vector_store %arg13[%c0_33, %c0_34, %c0_35], %57 {strides = array<i32>} : memref<4x8x8xf32, #tpu.memory_space<vmem>>, vector<1x8x8xf32>,
      %c0_36 = arith.constant 0 : index
      %c0_37 = arith.constant 0 : index
      %c0_38 = arith.constant 0 : index
      %58 = vector.load %arg11[%c0_36, %c0_37, %c0_38] : memref<4x8x1xf32, #tpu.memory_space<vmem>>, vector<1x8x1xf32>
      %59 = vector.shape_cast %58 : vector<1x8x1xf32> to vector<8x1xf32>
      %60 = vector.shape_cast %30 : vector<8x1xf32> to vector<1x8x1xf32>
      tpu.vector_store %arg11[%c0_36, %c0_37, %c0_38], %60 {strides = array<i32>} : memref<4x8x1xf32, #tpu.memory_space<vmem>>, vector<1x8x1xf32>,
      %c0_39 = arith.constant 0 : index
      %c0_40 = arith.constant 0 : index
      %c8 = arith.constant 8 : index
      %61 = vector.load %arg6[%c0_39, %c0_40, %c8] : memref<1x8x32xf32, #tpu.memory_space<vmem>>, vector<1x8x8xf32>
      %62 = vector.shape_cast %61 : vector<1x8x8xf32> to vector<8x8xf32>
      %c0_41 = arith.constant 0 : index
      %c0_42 = arith.constant 0 : index
      %c8_43 = arith.constant 8 : index
      %63 = vector.load %arg7[%c0_41, %c0_42, %c8_43] : memref<1x8x32xf32, #tpu.memory_space<vmem>>, vector<1x8x8xf32>
      %64 = vector.shape_cast %63 : vector<1x8x8xf32> to vector<8x8xf32>
      %cst_44 = arith.constant dense<0.000000e+00> : vector<8x8xf32>
      %65 = tpu.matmul %62, %64, %cst_44 {dimension_numbers = #tpu.dot_dimension_numbers<[1], [1], [0], [0], [0, 0, 1, 0], [], []>} : vector<8x8xf32>, vector<8x8xf32>, vector<8x8xf32> -> vector<8x8xf32>
      %cst_45 = arith.constant 0.353553385 : f32
      %66 = vector.broadcast %cst_45 : f32 to vector<8x8xf32>
      %67 = arith.mulf %65, %66 : vector<8x8xf32>
      %cst_46 = arith.constant -1.000000e+30 : f32
      %68 = vector.broadcast %cst_46 : f32 to vector<8x8xf32>
      %69 = arith.select %16, %67, %68 : vector<8x8xi1>, vector<8x8xf32>
      %c1 = arith.constant 1 : index
      %c0_47 = arith.constant 0 : index
      %c0_48 = arith.constant 0 : index
      %70 = vector.load %arg11[%c1, %c0_47, %c0_48] : memref<4x8x1xf32, #tpu.memory_space<vmem>>, vector<1x8x1xf32>
      %71 = vector.shape_cast %70 : vector<1x8x1xf32> to vector<8x1xf32>
      %cst_49 = arith.constant dense<0xFF800000> : vector<8xf32>
      %72 = vector.multi_reduction <maximumf>, %69, %cst_49 [1] : vector<8x8xf32> to vector<8xf32>
      %73 = vector.shape_cast %72 : vector<8xf32> to vector<8x1xf32>
      %74 = arith.maximumf %71, %73 : vector<8x1xf32>
      %75 = arith.subf %71, %74 : vector<8x1xf32>
      %76 = math.exp %75 : vector<8x1xf32>
      %77 = vector.broadcast %74 : vector<8x1xf32> to vector<8x8xf32>
      %78 = arith.subf %69, %77 : vector<8x8xf32>
      %79 = math.exp %78 : vector<8x8xf32>
      %cst_50 = arith.constant 0.000000e+00 : f32
      %80 = vector.broadcast %cst_50 : f32 to vector<8x8xf32>
      %81 = arith.select %16, %79, %80 : vector<8x8xi1>, vector<8x8xf32>
      %c1_51 = arith.constant 1 : index
      %c0_52 = arith.constant 0 : index
      %c0_53 = arith.constant 0 : index
      %82 = vector.load %arg12[%c1_51, %c0_52, %c0_53] : memref<4x8x1xf32, #tpu.memory_space<vmem>>, vector<1x8x1xf32>
      %83 = vector.shape_cast %82 : vector<1x8x1xf32> to vector<8x1xf32>
      %84 = arith.mulf %76, %83 : vector<8x1xf32>
      %cst_54 = arith.constant dense<0.000000e+00> : vector<8xf32>
      %85 = vector.multi_reduction <add>, %81, %cst_54 [1] : vector<8x8xf32> to vector<8xf32>
      %86 = vector.shape_cast %85 : vector<8xf32> to vector<8x1xf32>
      %87 = arith.addf %84, %86 : vector<8x1xf32>
      %c1_55 = arith.constant 1 : index
      %c0_56 = arith.constant 0 : index
      %c0_57 = arith.constant 0 : index
      %88 = vector.load %arg12[%c1_55, %c0_56, %c0_57] : memref<4x8x1xf32, #tpu.memory_space<vmem>>, vector<1x8x1xf32>
      %89 = vector.shape_cast %88 : vector<1x8x1xf32> to vector<8x1xf32>
      %90 = vector.shape_cast %87 : vector<8x1xf32> to vector<1x8x1xf32>
      tpu.vector_store %arg12[%c1_55, %c0_56, %c0_57], %90 {strides = array<i32>} : memref<4x8x1xf32, #tpu.memory_space<vmem>>, vector<1x8x1xf32>,
      %c0_58 = arith.constant 0 : index
      %c0_59 = arith.constant 0 : index
      %c8_60 = arith.constant 8 : index
      %91 = vector.load %arg8[%c0_58, %c0_59, %c8_60] : memref<1x8x32xf32, #tpu.memory_space<vmem>>, vector<1x8x8xf32>
      %92 = vector.shape_cast %91 : vector<1x8x8xf32> to vector<8x8xf32>
      %cst_61 = arith.constant dense<0.000000e+00> : vector<8x8xf32>
      %93 = tpu.matmul %81, %92, %cst_61 {dimension_numbers = #tpu.dot_dimension_numbers<[1], [0], [0], [1], [0, 0, 1, 1], [], []>} : vector<8x8xf32>, vector<8x8xf32>, vector<8x8xf32> -> vector<8x8xf32>
      %c1_62 = arith.constant 1 : index
      %c0_63 = arith.constant 0 : index
      %c0_64 = arith.constant 0 : index
      %94 = vector.load %arg13[%c1_62, %c0_63, %c0_64] : memref<4x8x8xf32, #tpu.memory_space<vmem>>, vector<1x8x8xf32>
      %95 = vector.shape_cast %94 : vector<1x8x8xf32> to vector<8x8xf32>
      %96 = vector.broadcast %76 : vector<8x1xf32> to vector<8x8xf32>
      %97 = arith.mulf %96, %95 : vector<8x8xf32>
      %98 = arith.addf %97, %93 : vector<8x8xf32>
      %c1_65 = arith.constant 1 : index
      %c0_66 = arith.constant 0 : index
      %c0_67 = arith.constant 0 : index
      %99 = vector.load %arg13[%c1_65, %c0_66, %c0_67] : memref<4x8x8xf32, #tpu.memory_space<vmem>>, vector<1x8x8xf32>
      %100 = vector.shape_cast %99 : vector<1x8x8xf32> to vector<8x8xf32>
      %101 = vector.shape_cast %98 : vector<8x8xf32> to vector<1x8x8xf32>
      tpu.vector_store %arg13[%c1_65, %c0_66, %c0_67], %101 {strides = array<i32>} : memref<4x8x8xf32, #tpu.memory_space<vmem>>, vector<1x8x8xf32>,
      %c1_68 = arith.constant 1 : index
      %c0_69 = arith.constant 0 : index
      %c0_70 = arith.constant 0 : index
      %102 = vector.load %arg11[%c1_68, %c0_69, %c0_70] : memref<4x8x1xf32, #tpu.memory_space<vmem>>, vector<1x8x1xf32>
      %103 = vector.shape_cast %102 : vector<1x8x1xf32> to vector<8x1xf32>
      %104 = vector.shape_cast %74 : vector<8x1xf32> to vector<1x8x1xf32>
      tpu.vector_store %arg11[%c1_68, %c0_69, %c0_70], %104 {strides = array<i32>} : memref<4x8x1xf32, #tpu.memory_space<vmem>>, vector<1x8x1xf32>,
      %c0_71 = arith.constant 0 : index
      %c0_72 = arith.constant 0 : index
      %c16 = arith.constant 16 : index
      %105 = vector.load %arg6[%c0_71, %c0_72, %c16] : memref<1x8x32xf32, #tpu.memory_space<vmem>>, vector<1x8x8xf32>
      %106 = vector.shape_cast %105 : vector<1x8x8xf32> to vector<8x8xf32>
      %c0_73 = arith.constant 0 : index
      %c0_74 = arith.constant 0 : index
      %c16_75 = arith.constant 16 : index
      %107 = vector.load %arg7[%c0_73, %c0_74, %c16_75] : memref<1x8x32xf32, #tpu.memory_space<vmem>>, vector<1x8x8xf32>
      %108 = vector.shape_cast %107 : vector<1x8x8xf32> to vector<8x8xf32>
      %cst_76 = arith.constant dense<0.000000e+00> : vector<8x8xf32>
      %109 = tpu.matmul %106, %108, %cst_76 {dimension_numbers = #tpu.dot_dimension_numbers<[1], [1], [0], [0], [0, 0, 1, 0], [], []>} : vector<8x8xf32>, vector<8x8xf32>, vector<8x8xf32> -> vector<8x8xf32>
      %cst_77 = arith.constant 0.353553385 : f32
      %110 = vector.broadcast %cst_77 : f32 to vector<8x8xf32>
      %111 = arith.mulf %109, %110 : vector<8x8xf32>
      %cst_78 = arith.constant -1.000000e+30 : f32
      %112 = vector.broadcast %cst_78 : f32 to vector<8x8xf32>
      %113 = arith.select %16, %111, %112 : vector<8x8xi1>, vector<8x8xf32>
      %c2 = arith.constant 2 : index
      %c0_79 = arith.constant 0 : index
      %c0_80 = arith.constant 0 : index
      %114 = vector.load %arg11[%c2, %c0_79, %c0_80] : memref<4x8x1xf32, #tpu.memory_space<vmem>>, vector<1x8x1xf32>
      %115 = vector.shape_cast %114 : vector<1x8x1xf32> to vector<8x1xf32>
      %cst_81 = arith.constant dense<0xFF800000> : vector<8xf32>
      %116 = vector.multi_reduction <maximumf>, %113, %cst_81 [1] : vector<8x8xf32> to vector<8xf32>
      %117 = vector.shape_cast %116 : vector<8xf32> to vector<8x1xf32>
      %118 = arith.maximumf %115, %117 : vector<8x1xf32>
      %119 = arith.subf %115, %118 : vector<8x1xf32>
      %120 = math.exp %119 : vector<8x1xf32>
      %121 = vector.broadcast %118 : vector<8x1xf32> to vector<8x8xf32>
      %122 = arith.subf %113, %121 : vector<8x8xf32>
      %123 = math.exp %122 : vector<8x8xf32>
      %cst_82 = arith.constant 0.000000e+00 : f32
      %124 = vector.broadcast %cst_82 : f32 to vector<8x8xf32>
      %125 = arith.select %16, %123, %124 : vector<8x8xi1>, vector<8x8xf32>
      %c2_83 = arith.constant 2 : index
      %c0_84 = arith.constant 0 : index
      %c0_85 = arith.constant 0 : index
      %126 = vector.load %arg12[%c2_83, %c0_84, %c0_85] : memref<4x8x1xf32, #tpu.memory_space<vmem>>, vector<1x8x1xf32>
      %127 = vector.shape_cast %126 : vector<1x8x1xf32> to vector<8x1xf32>
      %128 = arith.mulf %120, %127 : vector<8x1xf32>
      %cst_86 = arith.constant dense<0.000000e+00> : vector<8xf32>
      %129 = vector.multi_reduction <add>, %125, %cst_86 [1] : vector<8x8xf32> to vector<8xf32>
      %130 = vector.shape_cast %129 : vector<8xf32> to vector<8x1xf32>
      %131 = arith.addf %128, %130 : vector<8x1xf32>
      %c2_87 = arith.constant 2 : index
      %c0_88 = arith.constant 0 : index
      %c0_89 = arith.constant 0 : index
      %132 = vector.load %arg12[%c2_87, %c0_88, %c0_89] : memref<4x8x1xf32, #tpu.memory_space<vmem>>, vector<1x8x1xf32>
      %133 = vector.shape_cast %132 : vector<1x8x1xf32> to vector<8x1xf32>
      %134 = vector.shape_cast %131 : vector<8x1xf32> to vector<1x8x1xf32>
      tpu.vector_store %arg12[%c2_87, %c0_88, %c0_89], %134 {strides = array<i32>} : memref<4x8x1xf32, #tpu.memory_space<vmem>>, vector<1x8x1xf32>,
      %c0_90 = arith.constant 0 : index
      %c0_91 = arith.constant 0 : index
      %c16_92 = arith.constant 16 : index
      %135 = vector.load %arg8[%c0_90, %c0_91, %c16_92] : memref<1x8x32xf32, #tpu.memory_space<vmem>>, vector<1x8x8xf32>
      %136 = vector.shape_cast %135 : vector<1x8x8xf32> to vector<8x8xf32>
      %cst_93 = arith.constant dense<0.000000e+00> : vector<8x8xf32>
      %137 = tpu.matmul %125, %136, %cst_93 {dimension_numbers = #tpu.dot_dimension_numbers<[1], [0], [0], [1], [0, 0, 1, 1], [], []>} : vector<8x8xf32>, vector<8x8xf32>, vector<8x8xf32> -> vector<8x8xf32>
      %c2_94 = arith.constant 2 : index
      %c0_95 = arith.constant 0 : index
      %c0_96 = arith.constant 0 : index
      %138 = vector.load %arg13[%c2_94, %c0_95, %c0_96] : memref<4x8x8xf32, #tpu.memory_space<vmem>>, vector<1x8x8xf32>
      %139 = vector.shape_cast %138 : vector<1x8x8xf32> to vector<8x8xf32>
      %140 = vector.broadcast %120 : vector<8x1xf32> to vector<8x8xf32>
      %141 = arith.mulf %140, %139 : vector<8x8xf32>
      %142 = arith.addf %141, %137 : vector<8x8xf32>
      %c2_97 = arith.constant 2 : index
      %c0_98 = arith.constant 0 : index
      %c0_99 = arith.constant 0 : index
      %143 = vector.load %arg13[%c2_97, %c0_98, %c0_99] : memref<4x8x8xf32, #tpu.memory_space<vmem>>, vector<1x8x8xf32>
      %144 = vector.shape_cast %143 : vector<1x8x8xf32> to vector<8x8xf32>
      %145 = vector.shape_cast %142 : vector<8x8xf32> to vector<1x8x8xf32>
      tpu.vector_store %arg13[%c2_97, %c0_98, %c0_99], %145 {strides = array<i32>} : memref<4x8x8xf32, #tpu.memory_space<vmem>>, vector<1x8x8xf32>,
      %c2_100 = arith.constant 2 : index
      %c0_101 = arith.constant 0 : index
      %c0_102 = arith.constant 0 : index
      %146 = vector.load %arg11[%c2_100, %c0_101, %c0_102] : memref<4x8x1xf32, #tpu.memory_space<vmem>>, vector<1x8x1xf32>
      %147 = vector.shape_cast %146 : vector<1x8x1xf32> to vector<8x1xf32>
      %148 = vector.shape_cast %118 : vector<8x1xf32> to vector<1x8x1xf32>
      tpu.vector_store %arg11[%c2_100, %c0_101, %c0_102], %148 {strides = array<i32>} : memref<4x8x1xf32, #tpu.memory_space<vmem>>, vector<1x8x1xf32>,
      %c0_103 = arith.constant 0 : index
      %c0_104 = arith.constant 0 : index
      %c24 = arith.constant 24 : index
      %149 = vector.load %arg6[%c0_103, %c0_104, %c24] : memref<1x8x32xf32, #tpu.memory_space<vmem>>, vector<1x8x8xf32>
      %150 = vector.shape_cast %149 : vector<1x8x8xf32> to vector<8x8xf32>
      %c0_105 = arith.constant 0 : index
      %c0_106 = arith.constant 0 : index
      %c24_107 = arith.constant 24 : index
      %151 = vector.load %arg7[%c0_105, %c0_106, %c24_107] : memref<1x8x32xf32, #tpu.memory_space<vmem>>, vector<1x8x8xf32>
      %152 = vector.shape_cast %151 : vector<1x8x8xf32> to vector<8x8xf32>
      %cst_108 = arith.constant dense<0.000000e+00> : vector<8x8xf32>
      %153 = tpu.matmul %150, %152, %cst_108 {dimension_numbers = #tpu.dot_dimension_numbers<[1], [1], [0], [0], [0, 0, 1, 0], [], []>} : vector<8x8xf32>, vector<8x8xf32>, vector<8x8xf32> -> vector<8x8xf32>
      %cst_109 = arith.constant 0.353553385 : f32
      %154 = vector.broadcast %cst_109 : f32 to vector<8x8xf32>
      %155 = arith.mulf %153, %154 : vector<8x8xf32>
      %cst_110 = arith.constant -1.000000e+30 : f32
      %156 = vector.broadcast %cst_110 : f32 to vector<8x8xf32>
      %157 = arith.select %16, %155, %156 : vector<8x8xi1>, vector<8x8xf32>
      %c3 = arith.constant 3 : index
      %c0_111 = arith.constant 0 : index
      %c0_112 = arith.constant 0 : index
      %158 = vector.load %arg11[%c3, %c0_111, %c0_112] : memref<4x8x1xf32, #tpu.memory_space<vmem>>, vector<1x8x1xf32>
      %159 = vector.shape_cast %158 : vector<1x8x1xf32> to vector<8x1xf32>
      %cst_113 = arith.constant dense<0xFF800000> : vector<8xf32>
      %160 = vector.multi_reduction <maximumf>, %157, %cst_113 [1] : vector<8x8xf32> to vector<8xf32>
      %161 = vector.shape_cast %160 : vector<8xf32> to vector<8x1xf32>
      %162 = arith.maximumf %159, %161 : vector<8x1xf32>
      %163 = arith.subf %159, %162 : vector<8x1xf32>
      %164 = math.exp %163 : vector<8x1xf32>
      %165 = vector.broadcast %162 : vector<8x1xf32> to vector<8x8xf32>
      %166 = arith.subf %157, %165 : vector<8x8xf32>
      %167 = math.exp %166 : vector<8x8xf32>
      %cst_114 = arith.constant 0.000000e+00 : f32
      %168 = vector.broadcast %cst_114 : f32 to vector<8x8xf32>
      %169 = arith.select %16, %167, %168 : vector<8x8xi1>, vector<8x8xf32>
      %c3_115 = arith.constant 3 : index
      %c0_116 = arith.constant 0 : index
      %c0_117 = arith.constant 0 : index
      %170 = vector.load %arg12[%c3_115, %c0_116, %c0_117] : memref<4x8x1xf32, #tpu.memory_space<vmem>>, vector<1x8x1xf32>
      %171 = vector.shape_cast %170 : vector<1x8x1xf32> to vector<8x1xf32>
      %172 = arith.mulf %164, %171 : vector<8x1xf32>
      %cst_118 = arith.constant dense<0.000000e+00> : vector<8xf32>
      %173 = vector.multi_reduction <add>, %169, %cst_118 [1] : vector<8x8xf32> to vector<8xf32>
      %174 = vector.shape_cast %173 : vector<8xf32> to vector<8x1xf32>
      %175 = arith.addf %172, %174 : vector<8x1xf32>
      %c3_119 = arith.constant 3 : index
      %c0_120 = arith.constant 0 : index
      %c0_121 = arith.constant 0 : index
      %176 = vector.load %arg12[%c3_119, %c0_120, %c0_121] : memref<4x8x1xf32, #tpu.memory_space<vmem>>, vector<1x8x1xf32>
      %177 = vector.shape_cast %176 : vector<1x8x1xf32> to vector<8x1xf32>
      %178 = vector.shape_cast %175 : vector<8x1xf32> to vector<1x8x1xf32>
      tpu.vector_store %arg12[%c3_119, %c0_120, %c0_121], %178 {strides = array<i32>} : memref<4x8x1xf32, #tpu.memory_space<vmem>>, vector<1x8x1xf32>,
      %c0_122 = arith.constant 0 : index
      %c0_123 = arith.constant 0 : index
      %c24_124 = arith.constant 24 : index
      %179 = vector.load %arg8[%c0_122, %c0_123, %c24_124] : memref<1x8x32xf32, #tpu.memory_space<vmem>>, vector<1x8x8xf32>
      %180 = vector.shape_cast %179 : vector<1x8x8xf32> to vector<8x8xf32>
      %cst_125 = arith.constant dense<0.000000e+00> : vector<8x8xf32>
      %181 = tpu.matmul %169, %180, %cst_125 {dimension_numbers = #tpu.dot_dimension_numbers<[1], [0], [0], [1], [0, 0, 1, 1], [], []>} : vector<8x8xf32>, vector<8x8xf32>, vector<8x8xf32> -> vector<8x8xf32>
      %c3_126 = arith.constant 3 : index
      %c0_127 = arith.constant 0 : index
      %c0_128 = arith.constant 0 : index
      %182 = vector.load %arg13[%c3_126, %c0_127, %c0_128] : memref<4x8x8xf32, #tpu.memory_space<vmem>>, vector<1x8x8xf32>
      %183 = vector.shape_cast %182 : vector<1x8x8xf32> to vector<8x8xf32>
      %184 = vector.broadcast %164 : vector<8x1xf32> to vector<8x8xf32>
      %185 = arith.mulf %184, %183 : vector<8x8xf32>
      %186 = arith.addf %185, %181 : vector<8x8xf32>
      %c3_129 = arith.constant 3 : index
      %c0_130 = arith.constant 0 : index
      %c0_131 = arith.constant 0 : index
      %187 = vector.load %arg13[%c3_129, %c0_130, %c0_131] : memref<4x8x8xf32, #tpu.memory_space<vmem>>, vector<1x8x8xf32>
      %188 = vector.shape_cast %187 : vector<1x8x8xf32> to vector<8x8xf32>
      %189 = vector.shape_cast %186 : vector<8x8xf32> to vector<1x8x8xf32>
      tpu.vector_store %arg13[%c3_129, %c0_130, %c0_131], %189 {strides = array<i32>} : memref<4x8x8xf32, #tpu.memory_space<vmem>>, vector<1x8x8xf32>,
      %c3_132 = arith.constant 3 : index
      %c0_133 = arith.constant 0 : index
      %c0_134 = arith.constant 0 : index
      %190 = vector.load %arg11[%c3_132, %c0_133, %c0_134] : memref<4x8x1xf32, #tpu.memory_space<vmem>>, vector<1x8x1xf32>
      %191 = vector.shape_cast %190 : vector<1x8x1xf32> to vector<8x1xf32>
      %192 = vector.shape_cast %162 : vector<8x1xf32> to vector<1x8x1xf32>
      tpu.vector_store %arg11[%c3_132, %c0_133, %c0_134], %192 {strides = array<i32>} : memref<4x8x1xf32, #tpu.memory_space<vmem>>, vector<1x8x1xf32>,
    } else {
    }
    %c0_i32_2 = arith.constant 0 : i32
    %10 = arith.cmpi eq, %arg3, %c0_i32_2 : i32
    %11 = arith.extui %10 : i1 to i32
    %c0_i32_3 = arith.constant 0 : i32
    %12 = arith.cmpi ne, %11, %c0_i32_3 : i32
    scf.if %12 {
      %c0 = arith.constant 0 : index
      %c0_4 = arith.constant 0 : index
      %c0_5 = arith.constant 0 : index
      %13 = vector.load %arg12[%c0, %c0_4, %c0_5] : memref<4x8x1xf32, #tpu.memory_space<vmem>>, vector<1x8x1xf32>
      %14 = vector.shape_cast %13 : vector<1x8x1xf32> to vector<8x1xf32>
      %cst = arith.constant 0.000000e+00 : f32
      %15 = vector.broadcast %cst : f32 to vector<8x1xf32>
      %16 = arith.cmpf oeq, %14, %15 : vector<8x1xf32>
      %cst_6 = arith.constant 1.000000e+00 : f32
      %17 = vector.broadcast %cst_6 : f32 to vector<8x1xf32>
      %18 = arith.select %16, %17, %14 : vector<8x1xi1>, vector<8x1xf32>
      %19 = tpu.reciprocal %18 {approx = true} : vector<8x1xf32> -> vector<8x1xf32>
      %c0_7 = arith.constant 0 : index
      %c0_8 = arith.constant 0 : index
      %c0_9 = arith.constant 0 : index
      %20 = vector.load %arg13[%c0_7, %c0_8, %c0_9] : memref<4x8x8xf32, #tpu.memory_space<vmem>>, vector<1x8x8xf32>
      %21 = vector.shape_cast %20 : vector<1x8x8xf32> to vector<8x8xf32>
      %22 = vector.broadcast %19 : vector<8x1xf32> to vector<8x8xf32>
      %23 = arith.mulf %21, %22 : vector<8x8xf32>
      %c0_10 = arith.constant 0 : index
      %c0_11 = arith.constant 0 : index
      %c0_12 = arith.constant 0 : index
      %24 = vector.load %arg10[%c0_10, %c0_11, %c0_12] : memref<1x8x32xf32, #tpu.memory_space<vmem>>, vector<1x8x8xf32>
      %25 = vector.shape_cast %24 : vector<1x8x8xf32> to vector<8x8xf32>
      %26 = vector.shape_cast %23 : vector<8x8xf32> to vector<1x8x8xf32>
      tpu.vector_store %arg10[%c0_10, %c0_11, %c0_12], %26 {strides = array<i32>} : memref<1x8x32xf32, #tpu.memory_space<vmem>>, vector<1x8x8xf32>,
      %c1 = arith.constant 1 : index
      %c0_13 = arith.constant 0 : index
      %c0_14 = arith.constant 0 : index
      %27 = vector.load %arg12[%c1, %c0_13, %c0_14] : memref<4x8x1xf32, #tpu.memory_space<vmem>>, vector<1x8x1xf32>
      %28 = vector.shape_cast %27 : vector<1x8x1xf32> to vector<8x1xf32>
      %cst_15 = arith.constant 0.000000e+00 : f32
      %29 = vector.broadcast %cst_15 : f32 to vector<8x1xf32>
      %30 = arith.cmpf oeq, %28, %29 : vector<8x1xf32>
      %cst_16 = arith.constant 1.000000e+00 : f32
      %31 = vector.broadcast %cst_16 : f32 to vector<8x1xf32>
      %32 = arith.select %30, %31, %28 : vector<8x1xi1>, vector<8x1xf32>
      %33 = tpu.reciprocal %32 {approx = true} : vector<8x1xf32> -> vector<8x1xf32>
      %c1_17 = arith.constant 1 : index
      %c0_18 = arith.constant 0 : index
      %c0_19 = arith.constant 0 : index
      %34 = vector.load %arg13[%c1_17, %c0_18, %c0_19] : memref<4x8x8xf32, #tpu.memory_space<vmem>>, vector<1x8x8xf32>
      %35 = vector.shape_cast %34 : vector<1x8x8xf32> to vector<8x8xf32>
      %36 = vector.broadcast %33 : vector<8x1xf32> to vector<8x8xf32>
      %37 = arith.mulf %35, %36 : vector<8x8xf32>
      %c0_20 = arith.constant 0 : index
      %c0_21 = arith.constant 0 : index
      %c8 = arith.constant 8 : index
      %38 = vector.load %arg10[%c0_20, %c0_21, %c8] : memref<1x8x32xf32, #tpu.memory_space<vmem>>, vector<1x8x8xf32>
      %39 = vector.shape_cast %38 : vector<1x8x8xf32> to vector<8x8xf32>
      %40 = vector.shape_cast %37 : vector<8x8xf32> to vector<1x8x8xf32>
      tpu.vector_store %arg10[%c0_20, %c0_21, %c8], %40 {strides = array<i32>} : memref<1x8x32xf32, #tpu.memory_space<vmem>>, vector<1x8x8xf32>,
      %c2 = arith.constant 2 : index
      %c0_22 = arith.constant 0 : index
      %c0_23 = arith.constant 0 : index
      %41 = vector.load %arg12[%c2, %c0_22, %c0_23] : memref<4x8x1xf32, #tpu.memory_space<vmem>>, vector<1x8x1xf32>
      %42 = vector.shape_cast %41 : vector<1x8x1xf32> to vector<8x1xf32>
      %cst_24 = arith.constant 0.000000e+00 : f32
      %43 = vector.broadcast %cst_24 : f32 to vector<8x1xf32>
      %44 = arith.cmpf oeq, %42, %43 : vector<8x1xf32>
      %cst_25 = arith.constant 1.000000e+00 : f32
      %45 = vector.broadcast %cst_25 : f32 to vector<8x1xf32>
      %46 = arith.select %44, %45, %42 : vector<8x1xi1>, vector<8x1xf32>
      %47 = tpu.reciprocal %46 {approx = true} : vector<8x1xf32> -> vector<8x1xf32>
      %c2_26 = arith.constant 2 : index
      %c0_27 = arith.constant 0 : index
      %c0_28 = arith.constant 0 : index
      %48 = vector.load %arg13[%c2_26, %c0_27, %c0_28] : memref<4x8x8xf32, #tpu.memory_space<vmem>>, vector<1x8x8xf32>
      %49 = vector.shape_cast %48 : vector<1x8x8xf32> to vector<8x8xf32>
      %50 = vector.broadcast %47 : vector<8x1xf32> to vector<8x8xf32>
      %51 = arith.mulf %49, %50 : vector<8x8xf32>
      %c0_29 = arith.constant 0 : index
      %c0_30 = arith.constant 0 : index
      %c16 = arith.constant 16 : index
      %52 = vector.load %arg10[%c0_29, %c0_30, %c16] : memref<1x8x32xf32, #tpu.memory_space<vmem>>, vector<1x8x8xf32>
      %53 = vector.shape_cast %52 : vector<1x8x8xf32> to vector<8x8xf32>
      %54 = vector.shape_cast %51 : vector<8x8xf32> to vector<1x8x8xf32>
      tpu.vector_store %arg10[%c0_29, %c0_30, %c16], %54 {strides = array<i32>} : memref<1x8x32xf32, #tpu.memory_space<vmem>>, vector<1x8x8xf32>,
      %c3 = arith.constant 3 : index
      %c0_31 = arith.constant 0 : index
      %c0_32 = arith.constant 0 : index
      %55 = vector.load %arg12[%c3, %c0_31, %c0_32] : memref<4x8x1xf32, #tpu.memory_space<vmem>>, vector<1x8x1xf32>
      %56 = vector.shape_cast %55 : vector<1x8x1xf32> to vector<8x1xf32>
      %cst_33 = arith.constant 0.000000e+00 : f32
      %57 = vector.broadcast %cst_33 : f32 to vector<8x1xf32>
      %58 = arith.cmpf oeq, %56, %57 : vector<8x1xf32>
      %cst_34 = arith.constant 1.000000e+00 : f32
      %59 = vector.broadcast %cst_34 : f32 to vector<8x1xf32>
      %60 = arith.select %58, %59, %56 : vector<8x1xi1>, vector<8x1xf32>
      %61 = tpu.reciprocal %60 {approx = true} : vector<8x1xf32> -> vector<8x1xf32>
      %c3_35 = arith.constant 3 : index
      %c0_36 = arith.constant 0 : index
      %c0_37 = arith.constant 0 : index
      %62 = vector.load %arg13[%c3_35, %c0_36, %c0_37] : memref<4x8x8xf32, #tpu.memory_space<vmem>>, vector<1x8x8xf32>
      %63 = vector.shape_cast %62 : vector<1x8x8xf32> to vector<8x8xf32>
      %64 = vector.broadcast %61 : vector<8x1xf32> to vector<8x8xf32>
      %65 = arith.mulf %63, %64 : vector<8x8xf32>
      %c0_38 = arith.constant 0 : index
      %c0_39 = arith.constant 0 : index
      %c24 = arith.constant 24 : index
      %66 = vector.load %arg10[%c0_38, %c0_39, %c24] : memref<1x8x32xf32, #tpu.memory_space<vmem>>, vector<1x8x8xf32>
      %67 = vector.shape_cast %66 : vector<1x8x8xf32> to vector<8x8xf32>
      %68 = vector.shape_cast %65 : vector<8x8xf32> to vector<1x8x8xf32>
      tpu.vector_store %arg10[%c0_38, %c0_39, %c24], %68 {strides = array<i32>} : memref<1x8x32xf32, #tpu.memory_space<vmem>>, vector<1x8x8xf32>,
    } else {
    }
    return
  }
  func.func @transform_0(%arg0: i32, %arg1: i32, %arg2: i32, %arg3: i32, %arg4: memref<2xi32, #tpu.memory_space<smem>>, %arg5: memref<2xi32, #tpu.memory_space<smem>>) -> (i32, i32, i32) {
    %c0_i32 = arith.constant 0 : i32
    return %arg0, %arg2, %arg1 : i32, i32, i32
  }
  func.func @transform_1(%arg0: i32, %arg1: i32, %arg2: i32, %arg3: i32, %arg4: memref<2xi32, #tpu.memory_space<smem>>, %arg5: memref<2xi32, #tpu.memory_space<smem>>) -> (i32, i32, i32) {
    %c1_i32 = arith.constant 1 : i32
    %0 = arith.muli %arg0, %c1_i32 : i32
    %1 = arith.addi %0, %arg2 : i32
    %c1_i32_0 = arith.constant 1 : i32
    %2 = arith.muli %1, %c1_i32_0 : i32
    %3 = arith.addi %2, %arg3 : i32
    %4 = arith.index_cast %3 : i32 to index
    %5 = memref.load %arg5[%4] : memref<2xi32, #tpu.memory_space<smem>>
    %c0_i32 = arith.constant 0 : i32
    return %arg0, %5, %arg1 : i32, i32, i32
  }
  func.func @transform_2(%arg0: i32, %arg1: i32, %arg2: i32, %arg3: i32, %arg4: memref<2xi32, #tpu.memory_space<smem>>, %arg5: memref<2xi32, #tpu.memory_space<smem>>) -> (i32, i32, i32) {
    %c1_i32 = arith.constant 1 : i32
    %0 = arith.muli %arg0, %c1_i32 : i32
    %1 = arith.addi %0, %arg2 : i32
    %c1_i32_0 = arith.constant 1 : i32
    %2 = arith.muli %1, %c1_i32_0 : i32
    %3 = arith.addi %2, %arg3 : i32
    %4 = arith.index_cast %3 : i32 to index
    %5 = memref.load %arg5[%4] : memref<2xi32, #tpu.memory_space<smem>>
    %c0_i32 = arith.constant 0 : i32
    return %arg0, %5, %arg1 : i32, i32, i32
  }
  func.func @transform_3(%arg0: i32, %arg1: i32, %arg2: i32, %arg3: i32, %arg4: memref<2xi32, #tpu.memory_space<smem>>, %arg5: memref<2xi32, #tpu.memory_space<smem>>) -> (i32, i32, i32) {
    %c1_i32 = arith.constant 1 : i32
    %0 = arith.muli %arg0, %c1_i32 : i32
    %1 = arith.addi %0, %arg2 : i32
    %c1_i32_0 = arith.constant 1 : i32
    %2 = arith.muli %1, %c1_i32_0 : i32
    %3 = arith.addi %2, %arg3 : i32
    %4 = arith.index_cast %3 : i32 to index
    %5 = memref.load %arg5[%4] : memref<2xi32, #tpu.memory_space<smem>>
    %c0_i32 = arith.constant 0 : i32
    return %arg0, %arg2, %5 : i32, i32, i32
  }
  func.func @transform_4(%arg0: i32, %arg1: i32, %arg2: i32, %arg3: i32, %arg4: memref<2xi32, #tpu.memory_space<smem>>, %arg5: memref<2xi32, #tpu.memory_space<smem>>) -> (i32, i32, i32) {
    %c0_i32 = arith.constant 0 : i32
    return %arg0, %arg2, %arg1 : i32, i32, i32
  }
}

module attributes {stable_mosaic.version = 11 : i64} {
  func.func @_mlp_kernel(%arg0: i32, %arg1: i32, %arg2: memref<16x32xf32, #tpu.memory_space<vmem>>, %arg3: memref<128x32xf32, #tpu.memory_space<vmem>>, %arg4: memref<1x128xf32, #tpu.memory_space<vmem>>, %arg5: memref<32x128xf32, #tpu.memory_space<vmem>>, %arg6: memref<1x32xf32, #tpu.memory_space<vmem>>, %arg7: memref<16x32xf32, #tpu.memory_space<vmem>>, %arg8: memref<16x32xf32, #tpu.memory_space<vmem>>) attributes {dimension_semantics = [#tpu.dimension_semantics<parallel>, #tpu.dimension_semantics<arbitrary>], iteration_bounds = array<i64: 1, 1>, scalar_prefetch = 0 : i64, scratch_operands = 1 : i64, tpu.core_type = #tpu.core_type<tc>, window_params = [{transform_indices = @transform_0, window_bounds = array<i64: 16, 32>}, {transform_indices = @transform_1, window_bounds = array<i64: 128, 32>}, {transform_indices = @transform_2, window_bounds = array<i64: 1, 128>}, {transform_indices = @transform_3, window_bounds = array<i64: 32, 128>}, {pipeline_mode = #tpu.pipeline_mode<synchronous>, transform_indices = @transform_4, window_bounds = array<i64: 1, 32>}, {transform_indices = @transform_5, window_bounds = array<i64: 16, 32>}]} {
    %c0_i32 = arith.constant 0 : i32
    %0 = arith.cmpi eq, %arg1, %c0_i32 : i32
    %1 = arith.extui %0 : i1 to i32
    %c0_i32_0 = arith.constant 0 : i32
    %2 = arith.cmpi ne, %1, %c0_i32_0 : i32
    scf.if %2 {
      %cst_15 = arith.constant 0.000000e+00 : f32
      %17 = vector.broadcast %cst_15 : f32 to vector<16x32xf32>
      %c0_16 = arith.constant 0 : index
      %c0_17 = arith.constant 0 : index
      %18 = vector.load %arg8[%c0_16, %c0_17] : memref<16x32xf32, #tpu.memory_space<vmem>>, vector<16x32xf32>
      tpu.vector_store %arg8[%c0_16, %c0_17], %17 {strides = array<i32>} : memref<16x32xf32, #tpu.memory_space<vmem>>, vector<16x32xf32>,
    } else {
    }
    %c0 = arith.constant 0 : index
    %c0_1 = arith.constant 0 : index
    %3 = vector.load %arg2[%c0, %c0_1] : memref<16x32xf32, #tpu.memory_space<vmem>>, vector<16x32xf32>
    %c0_2 = arith.constant 0 : index
    %c0_3 = arith.constant 0 : index
    %4 = vector.load %arg3[%c0_2, %c0_3] : memref<128x32xf32, #tpu.memory_space<vmem>>, vector<128x32xf32>
    %cst = arith.constant dense<0.000000e+00> : vector<16x128xf32>
    %5 = tpu.matmul %3, %4, %cst {dimension_numbers = #tpu.dot_dimension_numbers<[1], [1], [0], [0], [0, 0, 1, 0], [], []>} : vector<16x32xf32>, vector<128x32xf32>, vector<16x128xf32> -> vector<16x128xf32>
    %c0_4 = arith.constant 0 : index
    %c0_5 = arith.constant 0 : index
    %6 = vector.load %arg4[%c0_4, %c0_5] : memref<1x128xf32, #tpu.memory_space<vmem>>, vector<1x128xf32>
    %7 = vector.broadcast %6 : vector<1x128xf32> to vector<16x128xf32>
    %8 = arith.addf %5, %7 : vector<16x128xf32>
    %c0_6 = arith.constant 0 : index
    %c0_7 = arith.constant 0 : index
    %9 = vector.load %arg8[%c0_6, %c0_7] : memref<16x32xf32, #tpu.memory_space<vmem>>, vector<16x32xf32>
    %c0_8 = arith.constant 0 : index
    %c0_9 = arith.constant 0 : index
    %10 = vector.load %arg5[%c0_8, %c0_9] : memref<32x128xf32, #tpu.memory_space<vmem>>, vector<32x128xf32>
    %cst_10 = arith.constant dense<0.000000e+00> : vector<16x32xf32>
    %11 = tpu.matmul %8, %10, %cst_10 {dimension_numbers = #tpu.dot_dimension_numbers<[1], [1], [0], [0], [0, 0, 1, 0], [], []>} : vector<16x128xf32>, vector<32x128xf32>, vector<16x32xf32> -> vector<16x32xf32>
    %12 = arith.addf %9, %11 : vector<16x32xf32>
    %c0_11 = arith.constant 0 : index
    %c0_12 = arith.constant 0 : index
    %13 = vector.load %arg8[%c0_11, %c0_12] : memref<16x32xf32, #tpu.memory_space<vmem>>, vector<16x32xf32>
    tpu.vector_store %arg8[%c0_11, %c0_12], %12 {strides = array<i32>} : memref<16x32xf32, #tpu.memory_space<vmem>>, vector<16x32xf32>,
    %c0_i32_13 = arith.constant 0 : i32
    %14 = arith.cmpi eq, %arg1, %c0_i32_13 : i32
    %15 = arith.extui %14 : i1 to i32
    %c0_i32_14 = arith.constant 0 : i32
    %16 = arith.cmpi ne, %15, %c0_i32_14 : i32
    scf.if %16 {
      %c0_15 = arith.constant 0 : index
      %c0_16 = arith.constant 0 : index
      %17 = vector.load %arg8[%c0_15, %c0_16] : memref<16x32xf32, #tpu.memory_space<vmem>>, vector<16x32xf32>
      %c0_17 = arith.constant 0 : index
      %c0_18 = arith.constant 0 : index
      %18 = vector.load %arg6[%c0_17, %c0_18] : memref<1x32xf32, #tpu.memory_space<vmem>>, vector<1x32xf32>
      %19 = vector.broadcast %18 : vector<1x32xf32> to vector<16x32xf32>
      %20 = arith.addf %17, %19 : vector<16x32xf32>
      %c0_19 = arith.constant 0 : index
      %c0_20 = arith.constant 0 : index
      %21 = vector.load %arg7[%c0_19, %c0_20] : memref<16x32xf32, #tpu.memory_space<vmem>>, vector<16x32xf32>
      tpu.vector_store %arg7[%c0_19, %c0_20], %20 {strides = array<i32>} : memref<16x32xf32, #tpu.memory_space<vmem>>, vector<16x32xf32>,
    } else {
    }
    return
  }
  func.func @transform_0(%arg0: i32, %arg1: i32) -> (i32, i32) {
    %c0_i32 = arith.constant 0 : i32
    %c0_i32_0 = arith.constant 0 : i32
    return %arg0, %c0_i32 : i32, i32
  }
  func.func @transform_1(%arg0: i32, %arg1: i32) -> (i32, i32) {
    %c0_i32 = arith.constant 0 : i32
    %c0_i32_0 = arith.constant 0 : i32
    return %arg1, %c0_i32 : i32, i32
  }
  func.func @transform_2(%arg0: i32, %arg1: i32) -> (i32, i32) {
    %c0_i32 = arith.constant 0 : i32
    %c0_i32_0 = arith.constant 0 : i32
    return %c0_i32, %arg1 : i32, i32
  }
  func.func @transform_3(%arg0: i32, %arg1: i32) -> (i32, i32) {
    %c0_i32 = arith.constant 0 : i32
    %c0_i32_0 = arith.constant 0 : i32
    return %c0_i32, %arg1 : i32, i32
  }
  func.func @transform_4(%arg0: i32, %arg1: i32) -> (i32, i32) {
    %c0_i32 = arith.constant 0 : i32
    %c0_i32_0 = arith.constant 0 : i32
    %c0_i32_1 = arith.constant 0 : i32
    return %c0_i32, %c0_i32_0 : i32, i32
  }
  func.func @transform_5(%arg0: i32, %arg1: i32) -> (i32, i32) {
    %c0_i32 = arith.constant 0 : i32
    %c0_i32_0 = arith.constant 0 : i32
    return %arg0, %c0_i32 : i32, i32
  }
}

</mosaic_0001>

<bundles_post_ra>
// kernel: transformer_layer_pallas.6
= control target key start
LH: loop header
LB: loop body
LE: loop exit
PB: predicated region body
PF: predicated region fallthrough
CT: control target
= control target key end

     0   :  { %vm18_vm0 = vcmask 261120   ;;  %v184_v2 = vmov 0.0   ;;  %s242_s1 = inlined_call_operand.vmem [shape: f32[32,32], index: 1, kind: input, shape index: {}]   ;;  %s243_s0 = inlined_call_operand.vmem [shape: f32[16,32], index: 0, kind: input, shape index: {}]   ;;  %s244_s2 = inlined_call_operand.vmem [shape: f32[1,32], index: 2, kind: input, shape index: {}]   ;;  %s245_s3 = inlined_call_operand.vmem [shape: f32[16,32], index: 3, kind: output, shape index: {}]  }
   0x1   :  { %v25_v0 = vld [vmem:[%s242_s1] sm:$0xff]  ;;  %v26_v1 = vld [vmem:[%s242_s1 + $0x8] sm:$0xff]  ;;  %vm172_vm1 = vmpackc.low %vm18_vm0, %vm18_vm0  ;;  %20 = vst.msk [vmem:[#allocation2 + $0x8] sm:$0xff] %vm18_vm0, %v184_v2 }
   0x2   :  { %19 = vst.msk [vmem:[#allocation2] sm:$0xff] %vm18_vm0, %v184_v2  ;;  %v171_v3 = vpack.c.bf16 %v26_v1, %v25_v0  ;;  %v27_v4 = vld [vmem:[%s242_s1 + $0x10] sm:$0xff]  ;;  %v28_v5 = vld [vmem:[%s242_s1 + $0x18] sm:$0xff]  ;;  %v21_v6 = vld [vmem:[%s243_s0] sm:$0xff] }
   0x3   :  { %v177_v7 = vpack.c.bf16 %v28_v5, %v27_v4  ;;  %168 = vmatprep.mubr.msk.f32.mxu0 %vm18_vm0, %v21_v6  ;;  %v22_v8 = vld [vmem:[%s243_s0 + $0x8] sm:$0xff]  ;;  %v153_v15 = vld [vmem:[%s244_s2] ss:$0 sm:$0xff] }
   0x4   :  { %173 = vmatprep.subr.msk.bf16.mxu0 %vm172_vm1, %v171_v3 }
   0x5   :  { %176 = vmatpush3.bf16.xpose.msk.msra.mxu0 %vm172_vm1, %v171_v3 }
   0x6   :  { %179 = vmatprep.subr.msk.bf16.mxu0 %vm172_vm1, %v177_v7 }
   0x8   :  { %v24_v9 = vld [vmem:[#allocation2 + $0x8] sm:$0xff] }
   0x9   :  { %v23_v10 = vld [vmem:[#allocation2] sm:$0xff] }
   0xd   :  { %182 = vmatpush3.bf16.xpose.msk.msra.mxu0 %vm172_vm1, %v177_v7 }
  0x14   :  { %169 = vmatmul.mubr.msk.f32.vlgmr.msra.gmra.mrb[0].mxu0 %vm18_vm0, %v22_v8 }
  0xe7   :  { %v170_v11 = vpop.f32.mrb[0].mxu0 }
  0xe8   :  { %v124_v12 = vadd.f32 %v170_v11, %v24_v9  ;;  %v114_v13 = vpop.f32.mrb[1].mxu0 }
  0xe9   :  { %v123_v14 = vadd.f32 %v114_v13, %v23_v10 }
  0xea   :  { %126 = vst.msk [vmem:[#allocation2 + $0x8] sm:$0xff] %vm18_vm0, %v124_v12 }
  0xeb   :  { %125 = vst.msk [vmem:[#allocation2] sm:$0xff] %vm18_vm0, %v123_v14 }
  0xf1   :  { %v131_v16 = vld [vmem:[#allocation2 + $0x8] sm:$0xff] }
  0xf2   :  { %v140_v17 = vadd.f32 %v153_v15, %v131_v16  ;;  %v130_v18 = vld [vmem:[#allocation2] sm:$0xff] }
  0xf3   :  { %v139_v19 = vadd.f32 %v153_v15, %v130_v18 }
  0xf4   :  { %142 = vst.msk [vmem:[%s245_s3 + $0x8] sm:$0xff] %vm18_vm0, %v140_v17 }
  0xf5   :  { %141 = vst.msk [vmem:[%s245_s3] sm:$0xff] %vm18_vm0, %v139_v19 }

// kernel: transformer_layer_pallas.7
= control target key start
LH: loop header
LB: loop body
LE: loop exit
PB: predicated region body
PF: predicated region fallthrough
CT: control target
= control target key end

     0   :  { %vm25_vm0 = vcmask 261120   ;;  %s638_s0 = inlined_call_operand.vmem [shape: f32[16,32], index: 0, kind: input, shape index: {}]   ;;  %s639_s1 = inlined_call_operand.vmem [shape: f32[128,32], index: 1, kind: input, shape index: {}]   ;;  %s640_s2 = inlined_call_operand.vmem [shape: f32[1,128], index: 2, kind: input, shape index: {}]   ;;  %s641_s3 = inlined_call_operand.vmem [shape: f32[32,128], index: 3, kind: input, shape index: {}]   ;;  %s642_s4 = inlined_call_operand.vmem [shape: f32[1,32], index: 4, kind: input, shape index: {}]   ;;  %s643_s5 = inlined_call_operand.hbm [shape: f32[16,32], index: 5, kind: output, shape index: {}]  }
   0x1   :  { %v30_v0 = vld [vmem:[%s639_s1] sm:$0xff]  ;;  %v31_v1 = vld [vmem:[%s639_s1 + $0x8] sm:$0xff]  ;;  %v32_v2 = vld [vmem:[%s639_s1 + $0x10] sm:$0xff] }
   0x2   :  { %v390_v3 = vpack.c.bf16 %v31_v1, %v30_v0  ;;  %vm519_vm1 = vmpackc.low %vm25_vm0, %vm25_vm0  ;;  %v33_v5 = vld [vmem:[%s639_s1 + $0x18] sm:$0xff]  ;;  %v34_v7 = vld [vmem:[%s639_s1 + $0x20] sm:$0xff] }
   0x3   :  { %v396_v6 = vpack.c.bf16 %v33_v5, %v32_v2  ;;  %v28_v8 = vld [vmem:[%s638_s0] sm:$0xff]  ;;  %v35_v9 = vld [vmem:[%s639_s1 + $0x28] sm:$0xff]  ;;  %v187_v13 = vld [vmem:[%s641_s3 + $0x10] sm:$0xff] }
   0x4   :  { %392 = vmatprep.subr.msk.bf16.mxu0 %vm519_vm1, %v390_v3  ;;  %376 = vmatprep.mubr.msk.f32.mxu0 %vm25_vm0, %v28_v8  ;;  %v185_v10 = vld [vmem:[%s641_s3] sm:$0xff]  ;;  %v186_v11 = vld [vmem:[%s641_s3 + $0x8] sm:$0xff]  ;;  %v188_v14 = vld [vmem:[%s641_s3 + $0x18] sm:$0xff] }
   0x5   :  { %395 = vmatpush3.bf16.xpose.msk.msra.mxu0 %vm519_vm1, %v390_v3  ;;  %v438_v12 = vpack.c.bf16 %v186_v11, %v185_v10 }
   0x6   :  { %398 = vmatprep.subr.msk.bf16.mxu0 %vm519_vm1, %v396_v6 }
   0x7   :  { %10 = vsyncpa [#allocation4], 0  ;;  %v442_v15 = vpack.c.bf16 %v188_v14, %v187_v13  ;;  %v402_v16 = vpack.c.bf16 %v35_v9, %v34_v7  ;;  %439 = vmatprep.subr.bf16.mxu1 %v438_v12  ;;  %v36_v17 = vld [vmem:[%s639_s1 + $0x30] sm:$0xff]  ;;  %v37_v18 = vld [vmem:[%s639_s1 + $0x38] sm:$0xff]  ;;  %v474_v33 = vmov 0.0  }
   0x8   :  { %441 = vmatpush3.bf16.xpose.msra.mxu1 %v438_v12  ;;  %v408_v19 = vpack.c.bf16 %v37_v18, %v36_v17  ;;  %v38_v20 = vld [vmem:[%s639_s1 + $0x40] sm:$0xff]  ;;  %v39_v21 = vld [vmem:[%s639_s1 + $0x48] sm:$0xff]  ;;  %v40_v23 = vld [vmem:[%s639_s1 + $0x50] sm:$0xff]  ;;  %27 = vst.msk [vmem:[#allocation2 + $0x8] sm:$0xff] %vm25_vm0, %v474_v33 }
   0x9   :  { %443 = vmatprep.subr.bf16.mxu1 %v442_v15  ;;  %v414_v22 = vpack.c.bf16 %v39_v21, %v38_v20  ;;  %v41_v24 = vld [vmem:[%s639_s1 + $0x58] sm:$0xff]  ;;  %v42_v26 = vld [vmem:[%s639_s1 + $0x60] sm:$0xff]  ;;  %v43_v27 = vld [vmem:[%s639_s1 + $0x68] sm:$0xff]  ;;  %26 = vst.msk [vmem:[#allocation2] sm:$0xff] %vm25_vm0, %v474_v33 }
   0xa   :  { %v420_v25 = vpack.c.bf16 %v41_v24, %v40_v23  ;;  %v426_v28 = vpack.c.bf16 %v43_v27, %v42_v26  ;;  %v44_v29 = vld [vmem:[%s639_s1 + $0x70] sm:$0xff]  ;;  %v45_v30 = vld [vmem:[%s639_s1 + $0x78] sm:$0xff]  ;;  %v29_v32 = vld [vmem:[%s638_s0 + $0x8] sm:$0xff] }
   0xb   :  { %v432_v31 = vpack.c.bf16 %v45_v30, %v44_v29  ;;  %v300_v34 = vld [vmem:[%s640_s2] ss:$0 sm:$0xff]  ;;  %s475_s2 = smov [#allocation3]  }
   0xc   :  { %v319_v45 = vld [vmem:[%s642_s4] ss:$0 sm:$0xff]  ;;  %s289_s13 = sshll.u32 %s475_s2, 4  ;;  %s290_s13 = int_to_ptr.vmem [resolvable:$true] %s289_s13 }
   0xd   :  { %401 = vmatpush3.bf16.xpose.msk.msra.mxu0 %vm519_vm1, %v396_v6  ;;  %s450_s14 = scalar_lea.vmem %s290_s13, 256  ;;  %p455_p1 = scmp.lt.s32.totalorder %s290_s13, %s290_s13 }
   0xe   :  { %404 = vmatprep.subr.msk.bf16.mxu0 %vm519_vm1, %v402_v16  ;;  %p451_p0 = scmp.ne.s32.totalorder %s290_s13, %s450_s14  ;;  %p456_p2 = scmp.lt.s32.totalorder %s450_s14, %s450_s14 }
   0xf   :  { %v184_v39 = vld [vmem:[#allocation2 + $0x8] sm:$0xff] }
  0x10   :  { %445 = vmatpush3.bf16.xpose.msra.mxu1 %v442_v15  ;;  %v183_v40 = vld [vmem:[#allocation2] sm:$0xff]  ;;  %p457_p3 = por %p456_p2, %p455_p1 }
  0x12   :  { %p458_p4 = pnand %p457_p3, %p451_p0 }
  0x15   :  { %407 = vmatpush3.bf16.xpose.msk.msra.mxu0 %vm519_vm1, %v402_v16 }
  0x16   :  { %410 = vmatprep.subr.msk.bf16.mxu0 %vm519_vm1, %v408_v19 }
  0x1d   :  { %413 = vmatpush3.bf16.xpose.msk.msra.mxu0 %vm519_vm1, %v408_v19 }
  0x1e   :  { %416 = vmatprep.subr.msk.bf16.mxu0 %vm519_vm1, %v414_v22 }
  0x25   :  { %419 = vmatpush3.bf16.xpose.msk.msra.mxu0 %vm519_vm1, %v414_v22 }
  0x26   :  { %422 = vmatprep.subr.msk.bf16.mxu0 %vm519_vm1, %v420_v25 }
  0x2d   :  { %425 = vmatpush3.bf16.xpose.msk.msra.mxu0 %vm519_vm1, %v420_v25 }
  0x2e   :  { %428 = vmatprep.subr.msk.bf16.mxu0 %vm519_vm1, %v426_v28 }
  0x35   :  { %431 = vmatpush3.bf16.xpose.msk.msra.mxu0 %vm519_vm1, %v426_v28 }
  0x36   :  { %434 = vmatprep.subr.msk.bf16.mxu0 %vm519_vm1, %v432_v31 }
  0x3d   :  { %437 = vmatpush3.bf16.xpose.msk.msra.mxu0 %vm519_vm1, %v432_v31 }
  0x44   :  { %377 = vmatmul.mubr.msk.f32.vlgmr.msra.gmra.mrb[0].mxu0 %vm25_vm0, %v29_v32 }
 0x117   :  { %v378_v35 = vpop.f32.mrb[0].mxu0 }
 0x118   :  { %v174_v36 = vpop.f32.mrb[1].mxu0  ;;  %v180_v38 = vadd.f32 %v378_v35, %v300_v34 }
 0x119   :  { %v175_v37 = vadd.f32 %v300_v34, %v174_v36 }
 0x11b   :  { %387 = vmatprep.mubr.f32.mxu1 %v175_v37 }
 0x11c   :  { %388 = vmatmul.mubr.f32.vlgmr.msra.gmra.mrb[0].mxu1 %v180_v38 }
 0x1ef   :  { %v389_v41 = vpop.f32.mrb[0].mxu1 }
 0x1f0   :  { %v265_v42 = vadd.f32 %v389_v41, %v184_v39  ;;  %v255_v43 = vpop.f32.mrb[1].mxu1 }
 0x1f1   :  { %v264_v44 = vadd.f32 %v255_v43, %v183_v40 }
 0x1f2   :  { %267 = vst.msk [vmem:[#allocation2 + $0x8] sm:$0xff] %vm25_vm0, %v265_v42 }
 0x1f3   :  { %266 = vst.msk [vmem:[#allocation2] sm:$0xff] %vm25_vm0, %v264_v44 }
 0x1f9   :  { %v272_v46 = vld [vmem:[#allocation2 + $0x8] sm:$0xff] }
 0x1fa   :  { %v271_v47 = vld [vmem:[#allocation2] sm:$0xff]  ;;  %v281_v48 = vadd.f32 %v319_v45, %v272_v46 }
 0x1fb   :  { %v280_v49 = vadd.f32 %v319_v45, %v271_v47 }
 0x1fc   :  { %283 = vst.msk [vmem:[#allocation3 + $0x8] sm:$0xff] %vm25_vm0, %v281_v48 }
 0x1fd   :  { %282 = vst.msk [vmem:[#allocation3] sm:$0xff] %vm25_vm0, %v280_v49 }
 0x1fe   :  { %461 = shalt.err (!%p458_p4)
}
 0x1ff   :  { %s462_s16 = scalar_lea.hbm %s643_s5, 256 }
 0x200   :  { %p463_p5 = scmp.ne.s32.totalorder %s643_s5, %s462_s16  ;;  %p466_p6 = scmp.lt.u32.totalorder %s462_s16, %s643_s5 }
 0x202   :  { %p468_p7 = pnand %p466_p6, %p463_p5 }
 0x204   :  { %471 = shalt.err (!%p468_p7)
}
 0x205   :  { %s476_s20 = smov 128   ;;  %s477_s21 = smov 8  }
 0x206   :  { %295 = dma.vmem_to_hbm [thread:$0]  %s290_s13, 256, %s643_s5, [#allocation4], %s476_s20, %s476_s20, %s477_s21  }
 0x207   :  { %472 = dma.done.wait [#allocation4], 256  }
 0x208   :  { %473 = vsyncadd [#allocation4], 4294967040 }
 0x209   :  { %299 = vsyncpa [#allocation4], 1 }

// kernel: transformer_layer_pallas.4
= control target key start
LH: loop header
LB: loop body
LE: loop exit
PB: predicated region body
PF: predicated region fallthrough
CT: control target
= control target key end

     0   :  { %vm33_vm0 = vcmask 261120   ;;  %v503_v3 = vmov 0.0   ;;  %s677_s1 = inlined_call_operand.vmem [shape: f32[32,32], index: 1, kind: input, shape index: {}]   ;;  %s678_s0 = inlined_call_operand.vmem [shape: f32[16,32], index: 0, kind: input, shape index: {}]   ;;  %s679_s2 = inlined_call_operand.vmem [shape: f32[32,32], index: 2, kind: input, shape index: {}]   ;;  %s680_s3 = inlined_call_operand.vmem [shape: f32[32,32], index: 3, kind: input, shape index: {}]   ;;  %s681_s4 = inlined_call_operand.vmem [shape: f32[1,32], index: 4, kind: input, shape index: {}]   ;;  %s682_s5 = inlined_call_operand.vmem [shape: f32[1,32], index: 5, kind: input, shape index: {}]   ;;  %s683_s7 = inlined_call_operand.vmem [shape: f32[16,32], index: 7, kind: output, shape index: {0}]   ;;  %s684_s8 = inlined_call_operand.vmem [shape: f32[16,32], index: 8, kind: output, shape index: {1}]   ;;  %s685_s6 = inlined_call_operand.vmem [shape: f32[1,32], index: 6, kind: input, shape index: {}]   ;;  %s686_s9 = inlined_call_operand.vmem [shape: f32[16,32], index: 9, kind: output, shape index: {2}]  }
   0x1   :  { %v44_v0 = vld [vmem:[%s677_s1] sm:$0xff]  ;;  %v45_v1 = vld [vmem:[%s677_s1 + $0x8] sm:$0xff]  ;;  %vm562_vm1 = vmpackc.low %vm33_vm0, %vm33_vm0  ;;  %35 = vst.msk [vmem:[#allocation2 + $0x8] sm:$0xff] %vm33_vm0, %v503_v3 }
   0x2   :  { %34 = vst.msk [vmem:[#allocation2] sm:$0xff] %vm33_vm0, %v503_v3  ;;  %36 = vst.msk [vmem:[#allocation3] sm:$0xff] %vm33_vm0, %v503_v3  ;;  %v466_v4 = vpack.c.bf16 %v45_v1, %v44_v0  ;;  %v46_v5 = vld [vmem:[%s677_s1 + $0x10] sm:$0xff]  ;;  %v47_v6 = vld [vmem:[%s677_s1 + $0x18] sm:$0xff] }
   0x3   :  { %37 = vst.msk [vmem:[#allocation3 + $0x8] sm:$0xff] %vm33_vm0, %v503_v3  ;;  %38 = vst.msk [vmem:[#allocation4] sm:$0xff] %vm33_vm0, %v503_v3  ;;  %v40_v7 = vld [vmem:[%s678_s0] sm:$0xff]  ;;  %v472_v8 = vpack.c.bf16 %v47_v6, %v46_v5  ;;  %v149_v10 = vld [vmem:[%s679_s2 + $0x8] sm:$0xff] }
   0x4   :  { %39 = vst.msk [vmem:[#allocation4 + $0x8] sm:$0xff] %vm33_vm0, %v503_v3  ;;  %441 = vmatprep.mubr.msk.f32.mxu0 %vm33_vm0, %v40_v7  ;;  %v148_v9 = vld [vmem:[%s679_s2] sm:$0xff]  ;;  %452 = vmatprep.mubr.msk.f32.mxu1 %vm33_vm0, %v40_v7  ;;  %v150_v12 = vld [vmem:[%s679_s2 + $0x10] sm:$0xff]  ;;  %v151_v13 = vld [vmem:[%s679_s2 + $0x18] sm:$0xff] }
   0x5   :  { %468 = vmatprep.subr.msk.bf16.mxu0 %vm562_vm1, %v466_v4  ;;  %v478_v11 = vpack.c.bf16 %v149_v10, %v148_v9  ;;  %v484_v14 = vpack.c.bf16 %v151_v13, %v150_v12  ;;  %v245_v15 = vld [vmem:[%s680_s3] sm:$0xff]  ;;  %v246_v16 = vld [vmem:[%s680_s3 + $0x8] sm:$0xff]  ;;  %v247_v18 = vld [vmem:[%s680_s3 + $0x10] sm:$0xff] }
   0x6   :  { %471 = vmatpush3.bf16.xpose.msk.msra.mxu0 %vm562_vm1, %v466_v4  ;;  %v490_v17 = vpack.c.bf16 %v246_v16, %v245_v15  ;;  %v248_v19 = vld [vmem:[%s680_s3 + $0x18] sm:$0xff]  ;;  %v41_v20 = vld [vmem:[%s678_s0 + $0x8] sm:$0xff]  ;;  %v412_v34 = vld [vmem:[%s681_s4] ss:$0 sm:$0xff] }
   0x7   :  { %474 = vmatprep.subr.msk.bf16.mxu0 %vm562_vm1, %v472_v8  ;;  %480 = vmatprep.subr.msk.bf16.mxu1 %vm562_vm1, %v478_v11  ;;  %v496_v21 = vpack.c.bf16 %v248_v19, %v247_v18  ;;  %v413_v36 = vld [vmem:[%s682_s5] ss:$0 sm:$0xff] }
   0x8   :  { %483 = vmatpush3.bf16.xpose.msk.msra.mxu1 %vm562_vm1, %v478_v11  ;;  %v43_v22 = vld [vmem:[#allocation2 + $0x8] sm:$0xff]  ;;  %v414_v50 = vld [vmem:[%s685_s6] ss:$0 sm:$0xff] }
   0x9   :  { %486 = vmatprep.subr.msk.bf16.mxu1 %vm562_vm1, %v484_v14  ;;  %v42_v23 = vld [vmem:[#allocation2] sm:$0xff]  ;;  %v146_v28 = vld [vmem:[#allocation3] sm:$0xff] }
   0xa   :  { %v147_v25 = vld [vmem:[#allocation3 + $0x8] sm:$0xff]  ;;  %v243_v45 = vld [vmem:[#allocation4] sm:$0xff] }
   0xb   :  { %v244_v44 = vld [vmem:[#allocation4 + $0x8] sm:$0xff] }
   0xe   :  { %477 = vmatpush3.bf16.xpose.msk.msra.mxu0 %vm562_vm1, %v472_v8 }
   0xf   :  { %492 = vmatprep.subr.msk.bf16.mxu0 %vm562_vm1, %v490_v17 }
  0x10   :  { %489 = vmatpush3.bf16.xpose.msk.msra.mxu1 %vm562_vm1, %v484_v14 }
  0x15   :  { %442 = vmatmul.mubr.msk.f32.vlgmr.msra.gmra.mrb[0].mxu0 %vm33_vm0, %v41_v20 }
  0x16   :  { %495 = vmatpush3.bf16.xpose.msk.msra.mxu0 %vm562_vm1, %v490_v17  ;;  %463 = vmatprep.mubr.msk.f32.mxu0 %vm33_vm0, %v40_v7 }
  0x17   :  { %498 = vmatprep.subr.msk.bf16.mxu0 %vm562_vm1, %v496_v21  ;;  %453 = vmatmul.mubr.msk.f32.vlgmr.msra.gmra.mrb[0].mxu1 %vm33_vm0, %v41_v20 }
  0x1e   :  { %501 = vmatpush3.bf16.xpose.msk.msra.mxu0 %vm562_vm1, %v496_v21 }
  0x25   :  { %464 = vmatmul.mubr.msk.f32.vlgmr.msra.gmra.mrb[2].mxu0 %vm33_vm0, %v41_v20 }
  0xe8   :  { %v443_v24 = vpop.f32.mrb[0].mxu0 }
  0xe9   :  { %v143_v26 = vadd.f32 %v443_v24, %v43_v22  ;;  %v133_v27 = vpop.f32.mrb[1].mxu0 }
  0xea   :  { %v142_v29 = vadd.f32 %v133_v27, %v42_v23  ;;  %v454_v30 = vpop.f32.mrb[0].mxu1 }
  0xeb   :  { %145 = vst.msk [vmem:[#allocation2 + $0x8] sm:$0xff] %vm33_vm0, %v143_v26  ;;  %v240_v31 = vadd.f32 %v454_v30, %v147_v25  ;;  %v230_v32 = vpop.f32.mrb[1].mxu1 }
  0xec   :  { %144 = vst.msk [vmem:[#allocation2] sm:$0xff] %vm33_vm0, %v142_v29  ;;  %v239_v33 = vadd.f32 %v230_v32, %v146_v28 }
  0xed   :  { %242 = vst.msk [vmem:[#allocation3 + $0x8] sm:$0xff] %vm33_vm0, %v240_v31 }
  0xee   :  { %241 = vst.msk [vmem:[#allocation3] sm:$0xff] %vm33_vm0, %v239_v33 }
  0xf2   :  { %v344_v35 = vld [vmem:[#allocation2 + $0x8] sm:$0xff] }
  0xf3   :  { %v353_v37 = vadd.f32 %v412_v34, %v344_v35  ;;  %v343_v38 = vld [vmem:[#allocation2] sm:$0xff] }
  0xf4   :  { %v352_v39 = vadd.f32 %v412_v34, %v343_v38  ;;  %v357_v40 = vld [vmem:[#allocation3 + $0x8] sm:$0xff] }
  0xf5   :  { %355 = vst.msk [vmem:[%s683_s7 + $0x8] sm:$0xff] %vm33_vm0, %v353_v37  ;;  %v366_v41 = vadd.f32 %v413_v36, %v357_v40  ;;  %v356_v42 = vld [vmem:[#allocation3] sm:$0xff] }
  0xf6   :  { %354 = vst.msk [vmem:[%s683_s7] sm:$0xff] %vm33_vm0, %v352_v39  ;;  %v365_v43 = vadd.f32 %v413_v36, %v356_v42 }
  0xf7   :  { %368 = vst.msk [vmem:[%s684_s8 + $0x8] sm:$0xff] %vm33_vm0, %v366_v41 }
  0xf8   :  { %367 = vst.msk [vmem:[%s684_s8] sm:$0xff] %vm33_vm0, %v365_v43  ;;  %v465_v46 = vpop.f32.mrb[2].mxu0 }
  0xf9   :  { %v337_v47 = vadd.f32 %v465_v46, %v244_v44  ;;  %v327_v48 = vpop.f32.mrb[3].mxu0 }
  0xfa   :  { %v336_v49 = vadd.f32 %v327_v48, %v243_v45 }
  0xfb   :  { %339 = vst.msk [vmem:[#allocation4 + $0x8] sm:$0xff] %vm33_vm0, %v337_v47 }
  0xfc   :  { %338 = vst.msk [vmem:[#allocation4] sm:$0xff] %vm33_vm0, %v336_v49 }
 0x102   :  { %v370_v51 = vld [vmem:[#allocation4 + $0x8] sm:$0xff] }
 0x103   :  { %v379_v52 = vadd.f32 %v414_v50, %v370_v51  ;;  %v369_v53 = vld [vmem:[#allocation4] sm:$0xff] }
 0x104   :  { %v378_v54 = vadd.f32 %v414_v50, %v369_v53 }
 0x105   :  { %381 = vst.msk [vmem:[%s686_s9 + $0x8] sm:$0xff] %vm33_vm0, %v379_v52 }
 0x106   :  { %380 = vst.msk [vmem:[%s686_s9] sm:$0xff] %vm33_vm0, %v378_v54 }

// kernel: transformer_layer_pallas.5
= control target key start
LH: loop header
LB: loop body
LE: loop exit
PB: predicated region body
PF: predicated region fallthrough
CT: control target
= control target key end

     0   :  { %s1933_s0 = inlined_call_operand.vmem [shape: s32[2], index: 0, kind: input, shape index: {}]   ;;  %s1934_s2 = inlined_call_operand.vmem [shape: f32[2,8,32], index: 2, kind: input, shape index: {}]   ;;  %s1935_s3 = inlined_call_operand.vmem [shape: f32[2,8,32], index: 3, kind: input, shape index: {}]   ;;  %s1936_s4 = inlined_call_operand.vmem [shape: f32[2,8,32], index: 4, kind: input, shape index: {}]   ;;  %s1937_s5 = inlined_call_operand.vmem [shape: s8[2,8,8], index: 5, kind: input, shape index: {}]   ;;  %s1938_s6 = inlined_call_operand.vmem [shape: f32[2,8,32], index: 6, kind: output, shape index: {}]   ;;  %s1939_s1 = inlined_call_operand.vmem [shape: s32[2], index: 1, kind: input, shape index: {}]  }
   0x1   :  { %s11_s23 = sshll.u32 %s1933_s0, 4  ;;  %s15_s26 = sshll.u32 %s1939_s1, 4  ;;  %s12_s23 = int_to_ptr.vmem [resolvable:$true] %s11_s23  ;;  %s16_s26 = int_to_ptr.vmem [resolvable:$true] %s15_s26 }
   0x2   :  { %s1635_s27 = scalar_lea.vmem %s12_s23, 16  ;;  %p1640_p1 = scmp.lt.s32.totalorder %s12_s23, %s12_s23 }
   0x3   :  { %p1636_p0 = scmp.ne.s32.totalorder %s12_s23, %s1635_s27  ;;  %p1641_p2 = scmp.lt.s32.totalorder %s1635_s27, %s1635_s27 }
   0x5   :  { %p1642_p3 = por %p1641_p2, %p1640_p1 }
   0x7   :  { %p1643_p4 = pnand %p1642_p3, %p1636_p0 }
   0x9   :  { %1646 = shalt.err (!%p1643_p4)  }
   0xa   :  { %s1685_s28 = smov [#allocation6]   ;;  %s1647_s29 = scalar_lea.vmem %s16_s26, 16 }
   0xb   :  { %14 = dma.vmem_to_smem %s12_s23, 16, %s1685_s28, [#allocation5] }
   0xc   :  { %p1648_p5 = scmp.ne.s32.totalorder %s16_s26, %s1647_s29  ;;  %p1652_p6 = scmp.lt.s32.totalorder %s16_s26, %s16_s26 }
   0xd   :  { %p1653_p7 = scmp.lt.s32.totalorder %s1647_s29, %s1647_s29 }
   0xf   :  { %p1654_p8 = por %p1653_p7, %p1652_p6 }
  0x11   :  { %p1655_p9 = pnand %p1654_p8, %p1648_p5 }
  0x13   :  { %1658 = shalt.err (!%p1655_p9)  }
  0x14   :  { %s1686_s0 = smov [#allocation7]  }
  0x15   :  { %18 = dma.vmem_to_smem %s16_s26, 16, %s1686_s0, [#allocation5] }
  0x16   :  { %1671 = dma.done.wait [#allocation5], 32 }
  0x17   :  { %1672 = vsyncadd [#allocation5], 4294967264 }
  0x18   :  { %20 = sfence }
  0x19   :  { %s1740_s1 = smov 0   ;;  %s1742_s30 = smov 0  }
  0x1a   :  { %s1744_s7 = smov 0  }
  0x1b LB: > { %s52_s8 = sadd.s32 1, %s1679_s30  ;;  %p1491_p10 = scmp.ge.s32.totalorder %s1683_s7, 1  ;;  %s1683_s7 = sphi %s1744_s7, %s26_s7   ;;  %s1679_s30 = sphi %s1742_s30, %s1943_s30   ;;  %s1675_s1 = sphi %s1740_s1, %s1942_s1  }
  0x1c   : > { %p54_p11 = scmp.ge.s32.totalorder %s52_s8, 2  ;;  %p306_p12 = scmp.lt.s32.totalorder %s1683_s7, 3 }
  0x1e   : > { %s1945_s8 = smov (%p54_p11, %s52_s8), 0  ;;  %p307_p13 = pnand %p1491_p10, %p306_p12 }
  0x1f   : > { %p381_p0 = scmp.lt.s32.totalorder (!%p307_p13), %s1675_s1, 1  ;;  %s393_s9 = sld [smem:[#allocation7 + %s1675_s1]] (!%p307_p13)  ;;  %vm455_vm0 = vcmask (!%p307_p13), 7168   ;;  %v1687_v0 = vmov (!%p307_p13), -1e+30   ;;  %v1688_v1 = vmov (!%p307_p13), 0.0  }
  0x20   : > { %310 = sbr.rel (%p307_p13) target bundleno = 1553 (0x611), region = 36  ;;  %s409_s10 = sld [smem:[#allocation7 + %s1675_s1]] (!%p307_p13)  ;;  %456 = vst.msk [vmem:[#allocation2] sm:$0xff] (!%p307_p13), %vm455_vm0, %v1687_v0  ;;  %457 = vst.msk [vmem:[#allocation2 + $0x8] sm:$0xff] (!%p307_p13), %vm455_vm0, %v1687_v0  ;;  %vm464_vm1 = vcmask (!%p307_p13), 64512  }
  0x21   : > { %s1764_s11 = sld [smem:[#allocation7 + %s1675_s1]] (!%p307_p13)  ;;  %458 = vst.msk [vmem:[#allocation2 + $0x10] sm:$0xff] (!%p307_p13), %vm455_vm0, %v1687_v0  ;;  %459 = vst.msk [vmem:[#allocation2 + $0x18] sm:$0xff] (!%p307_p13), %vm455_vm0, %v1687_v0 }
  0x22   : > { %460 = vst.msk [vmem:[#allocation3] sm:$0xff] (!%p307_p13), %vm455_vm0, %v1688_v1  ;;  %461 = vst.msk [vmem:[#allocation3 + $0x8] sm:$0xff] (!%p307_p13), %vm455_vm0, %v1688_v1  ;;  %s470_s13 = sld [smem:[#allocation6 + %s1675_s1]] (!%p307_p13) }
  0x23   : > { %462 = vst.msk [vmem:[#allocation3 + $0x10] sm:$0xff] (!%p307_p13), %vm455_vm0, %v1688_v1  ;;  %463 = vst.msk [vmem:[#allocation3 + $0x18] sm:$0xff] (!%p307_p13), %vm455_vm0, %v1688_v1 }
  0x24   : > { %465 = vst.msk [vmem:[#allocation4] sm:$0xff] (!%p307_p13), %vm464_vm1, %v1688_v1  ;;  %466 = vst.msk [vmem:[#allocation4 + $0x8] sm:$0xff] (!%p307_p13), %vm464_vm1, %v1688_v1 }
  0x25   : > { %467 = vst.msk [vmem:[#allocation4 + $0x10] sm:$0xff] (!%p307_p13), %vm464_vm1, %v1688_v1  ;;  %468 = vst.msk [vmem:[#allocation4 + $0x18] sm:$0xff] (!%p307_p13), %vm464_vm1, %v1688_v1  ;;  %p396_p1 = scmp.lt.s32.totalorder (!%p307_p13), %s393_s9, 0 }
  0x26   : > { %p412_p2 = scmp.lt.s32.totalorder (!%p307_p13), %s409_s10, 0 }
  0x27   : > { %s382_s12 = scalar_select %p381_p0, %s1675_s1, 1 }
  0x28   : > { %s1947_s9 = smov (!%p396_p1, %s393_s9), 0  ;;  %s1949_s10 = smov (!%p412_p2, %s409_s10), 0 }
  0x29   : > { %s1492_s14 = sshll.u32 %s382_s12, 3  ;;  %s401_s21 = sadd.s32 %s1947_s9, %s382_s12 }
  0x2a   : > { %s390_s17 = scalar_lea.vmem %s1934_s2, %s1492_s14  ;;  %s1788_s20 = scalar_lea.vmem %s1938_s6, %s1492_s14 }
  0x2b   : > { %p430_p3 = scmp.lt.s32.totalorder %s1764_s11, 0  ;;  %s1493_s22 = sshll.u32 %s401_s21, 3 }
  0x2c   : > { %s417_s23 = sadd.s32 %s1949_s10, %s382_s12  ;;  %s403_s26 = scalar_lea.vmem %s1935_s3, %s1493_s22 }
  0x2d   : > { %s1794_s27 = sshll.u32 %s417_s23, 3  ;;  %s1951_s11 = smov (!%p430_p3, %s1764_s11), 0 }
  0x2e   : > { %s419_s0 = scalar_lea.vmem %s1936_s4, %s1794_s27  ;;  %s433_s1 = sadd.s32 %s1951_s11, %s382_s12 }
  0x2f   : > { %s1495_s14 = sshll.u32 %s433_s1, 1  ;;  %p1498_p4 = scmp.le.s32.totalorder %s470_s13, 0 }
  0x30   : > { %s435_s9 = scalar_lea.vmem %s1937_s5, %s1495_s14  ;;  %v478_v2 = vld [vmem:[%s403_s26] sm:$0xff] (!%p1498_p4)  ;;  %v1689_v3 = vmov (!%p1498_p4), 0.0   ;;  %vm1690_vm2 = vmmov (!%p1498_p4), 0   ;;  %v1691_v5 = vmov (!%p1498_p4), 0   ;;  %s1692_s10 = smov (!%p1498_p4), 120   ;;  %v755_v49 = vld [vmem:[#allocation2 + $0x8] sm:$0xff] (!%p1498_p4) }
  0x31   : > { %474 = sbr.rel (%p1498_p4) target bundleno = 1288 (0x508), region = 44  ;;  %1529 = vmatprep.subr.mxu0 (!%p1498_p4), %v1689_v3  ;;  %1531 = vmatprep.mubr.msk.f32.mxu0 (!%p1498_p4), %vm1690_vm2, %v1689_v3  ;;  %v477_v4 = vld [vmem:[%s390_s17] sm:$0xff] (!%p1498_p4)  ;;  %s1693_s11 = smov (!%p1498_p4), 112   ;;  %v954_v52 = vld [vmem:[#allocation2 + $0x10] sm:$0xff] (!%p1498_p4)  ;;  %v1870_v55 = vld [vmem:[#allocation2 + $0x18] sm:$0xff] (!%p1498_p4) }
  0x32   : > { %1530 = vmatpush3.xpose.msk.msra.mxu0 (!%p1498_p4), %vm464_vm1, %v478_v2  ;;  %1534 = vmatprep.subr.mxu1 (!%p1498_p4), %v1689_v3  ;;  %v475_v6 = vld [vmem:[%s435_s9] sm:$0x3] (!%p1498_p4)  ;;  %s1694_s12 = smov (!%p1498_p4), 104  }
  0x33   : > { %1536 = vmatprep.mubr.msk.f32.mxu1 (!%p1498_p4), %vm1690_vm2, %v1689_v3  ;;  %1544 = vmatprep.subr.mxu0 (!%p1498_p4), %v1689_v3  ;;  %vm476_vm3 = vnez (!%p1498_p4), %v475_v6  ;;  %v561_v15 = vld [vmem:[#allocation2] sm:$0xff] (!%p1498_p4) }
  0x34   : > { %1607 = vset.pattern.permute.xlu0 (!%p1498_p4), %v1691_v5  ;;  %1608 = vset.pattern.permute.xlu1 (!%p1498_p4), %v1691_v5  ;;  %v557_v7 = vsel (!%p1498_p4), %vm476_vm3, 16843009, %v1691_v5  ;;  %v1834_v19 = vld [vmem:[%s419_s0] sm:$0xff] (!%p1498_p4) }
  0x35   : > { %1532 = vmatmul.mubr.msk.f32.vlgmr.msra.gmra.mrb[0].mxu0 (!%p1498_p4), %vm464_vm1, %v477_v4  ;;  %v558_v8 = vunpack.c.0.s8 (!%p1498_p4), %v557_v7  ;;  %676 = vrot.lane.b32.xlu1 (!%p1498_p4), %v478_v2, %s1692_s10 }
  0x36   : > { %1546 = vmatprep.mubr.msk.f32.mxu0 (!%p1498_p4), %vm1690_vm2, %v1689_v3  ;;  %1535 = vmatpush3.msra.mxu1 (!%p1498_p4), %v1834_v19 }
  0x37   : > { %vm1815_vm4 = vcmp.ne.s32.totalorder (!%p1498_p4), %v558_v8, 0  ;;  %1539 = vmatprep.subr.mxu1 (!%p1498_p4), %v1689_v3 }
  0x39   : > { %673 = vrot.lane.b32.xlu1 %v477_v4, %s1692_s10 }
  0x3d   : > { %875 = vrot.lane.b32.xlu1 %v478_v2, %s1693_s11 }
  0x41   : > { %872 = vrot.lane.b32.xlu1 %v477_v4, %s1693_s11 }
  0x45   : > { %1074 = vrot.lane.b32.xlu1 %v478_v2, %s1694_s12 }
  0x49   : > { %1071 = vrot.lane.b32.xlu1 %v477_v4, %s1694_s12 }
  0xa7   : > { %v677_v20 = vpop.permute.xlu1 %676 }
  0xab   : > { %v674_v23 = vpop.permute.xlu1 %673 }
  0xaf   : > { %v876_v25 = vpop.permute.xlu1 %875 }
  0xb3   : > { %v873_v26 = vpop.permute.xlu1 %872 }
  0xb7   : > { %v1075_v29 = vpop.permute.xlu1 %1074 }
  0xbb   : > { %v1072_v30 = vpop.permute.xlu1 %1071 }
 0x108   : > { %v552_v9 = vpop.f32.mrb[0].mxu0 }
 0x109   : > { %v556_v11 = vmul.f32 0.35355338, %v552_v9  ;;  %v1533_v12 = vpop.f32.mrb[1].mxu0  ;;  %v660_v9 = vld [vmem:[#allocation4] sm:$0xff] }
 0x10b   : > { %v560_v13 = vsel %vm1815_vm4, %v556_v11, -1e+30 }
 0x10c   : > { %v562_v14 = vsel %vm464_vm1, %v560_v13, -inf }
 0x10d   : > { %563 = vmax.xlane.f32.xlu0 %v562_v14 }
 0x19a   : > { %v564_v16 = vpop.xlane.xlu0 %563 }
 0x19b   : > { %v565_v17 = vmax.f32 %v561_v15, %v564_v16 }
 0x19d   : > { %v566_v18 = vsub.f32 %v561_v15, %v565_v17  ;;  %669 = vst.msk [vmem:[#allocation2] sm:$0xff] %vm455_vm0, %v565_v17  ;;  %571 = vperm.xlu0 %1607, %v565_v17  }
 0x19f   : > { %v567_v48 = vmul.f32 1.442695, %v566_v18 }
 0x21c   : > { %v572_v21 = vpop.permute.xlu0 %571 }
 0x21d   : > { %v574_v22 = vsub.f32 %v560_v13, %v572_v21 }
 0x21f   : > { %v575_v24 = vmul.f32 1.442695, %v574_v22 }
 0x221   : > { %1609 = vpow2.f32 %v575_v24 }
 0x222   : > { %1611 = vpow2.f32 %v567_v48  ;;  %v859_v48 = vld [vmem:[#allocation4 + $0x8] sm:$0xff] }
 0x22b   : > { %v1610_v27 = vpop.eup %1609 }
 0x22c   : > { %v1840_v28 = vsel %vm1815_vm4, %v1610_v27, 0.0  ;;  %v1874_v60 = vpop.eup %1611 }
 0x22d   : > { %1537 = vmatmul.mubr.msk.f32.vlgmr.msra.gmra.mrb[0].mxu1 %vm464_vm1, %v1840_v28  ;;  %v580_v0 = vsel %vm464_vm1, %v1840_v28, 0.0 }
 0x22e   : > { %1540 = vmatpush3.xpose.msk.msra.mxu1 %vm464_vm1, %v677_v20  ;;  %1541 = vmatprep.mubr.msk.f32.mxu1 %vm1690_vm2, %v1689_v3 }
 0x22f   : > { %1549 = vmatprep.subr.mxu1 %v1689_v3 }
 0x231   : > { %1542 = vmatmul.mubr.msk.f32.vlgmr.msra.gmra.mrb[2].mxu1 %vm464_vm1, %v674_v23 }
 0x232   : > { %1550 = vmatpush3.xpose.msk.msra.mxu1 %vm464_vm1, %v876_v25  ;;  %1551 = vmatprep.mubr.msk.f32.mxu1 %vm1690_vm2, %v1689_v3 }
 0x233   : > { %1559 = vmatprep.subr.mxu1 %v1689_v3 }
 0x235   : > { %1552 = vmatmul.mubr.msk.f32.vlgmr.msra.gmra.mrb[4].mxu1 %vm464_vm1, %v873_v26 }
 0x236   : > { %1560 = vmatpush3.xpose.msk.msra.mxu1 %vm464_vm1, %v1075_v29  ;;  %1561 = vmatprep.mubr.msk.f32.mxu1 %vm1690_vm2, %v1689_v3 }
 0x239   : > { %1562 = vmatmul.mubr.msk.f32.vlgmr.msra.gmra.mrb[6].mxu1 %vm464_vm1, %v1072_v30 }
 0x300   : > { %v1858_v31 = vpop.f32.mrb[0].mxu1 }
 0x301   : > { %v1538_v32 = vpop.f32.mrb[1].mxu1 }
 0x302   : > { %v578_v32 = vld [vmem:[#allocation3] sm:$0xff] }
 0x304   : > { %v748_v33 = vpop.f32.mrb[2].mxu1 }
 0x305   : > { %v752_v34 = vmul.f32 0.35355338, %v748_v33  ;;  %v1543_v35 = vpop.f32.mrb[3].mxu1  ;;  %v579_v33 = vmul.f32 %v1874_v60, %v578_v32 }
 0x307   : > { %v753_v36 = vsel %vm1815_vm4, %v752_v34, -1e+30 }
 0x308   : > { %v947_v37 = vpop.f32.mrb[4].mxu1  ;;  %v756_v38 = vsel %vm464_vm1, %v753_v36, -inf }
 0x309   : > { %v951_v39 = vmul.f32 0.35355338, %v947_v37  ;;  %757 = vmax.xlane.f32.xlu1 %v756_v38  ;;  %v1553_v40 = vpop.f32.mrb[5].mxu1  ;;  %v972_v38 = vld [vmem:[#allocation3 + $0x10] sm:$0xff] }
 0x30b   : > { %v952_v41 = vsel %vm1815_vm4, %v951_v39, -1e+30 }
 0x30c   : > { %v1146_v42 = vpop.f32.mrb[6].mxu1  ;;  %v955_v43 = vsel %vm464_vm1, %v952_v41, -inf }
 0x30d   : > { %v1150_v44 = vmul.f32 0.35355338, %v1146_v42  ;;  %956 = vmax.xlane.f32.xlu0 %v955_v43  ;;  %v1563_v45 = vpop.f32.mrb[7].mxu1  ;;  %v1171_v43 = vld [vmem:[#allocation3 + $0x18] sm:$0xff] }
 0x30f   : > { %v1151_v46 = vsel %vm1815_vm4, %v1150_v44, -1e+30 }
 0x310   : > { %v1154_v47 = vsel %vm464_vm1, %v1151_v46, -inf }
 0x311   : > { %1155 = vmax.xlane.f32.xlu1 %v1154_v47 }
 0x396   : > { %v758_v50 = vpop.xlane.xlu1 %757 }
 0x397   : > { %v759_v51 = vmax.f32 %v755_v49, %v758_v50  ;;  %v1058_v50 = vld [vmem:[#allocation4 + $0x10] sm:$0xff] }
 0x399   : > { %868 = vst.msk [vmem:[#allocation2 + $0x8] sm:$0xff] %vm455_vm0, %v759_v51  ;;  %765 = vperm.xlu1 %1608, %v759_v51   ;;  %v760_v63 = vsub.f32 %v755_v49, %v759_v51 }
 0x39a   : > { %v957_v53 = vpop.xlane.xlu0 %956 }
 0x39b   : > { %v958_v54 = vmax.f32 %v954_v52, %v957_v53  ;;  %v761_v1 = vmul.f32 1.442695, %v760_v63 }
 0x39d   : > { %v959_v56 = vsub.f32 %v954_v52, %v958_v54  ;;  %1067 = vst.msk [vmem:[#allocation2 + $0x10] sm:$0xff] %vm455_vm0, %v958_v54  ;;  %964 = vperm.xlu0 %1607, %v958_v54  }
 0x39e   : > { %v1156_v57 = vpop.xlane.xlu1 %1155 }
 0x39f   : > { %v960_v58 = vmul.f32 1.442695, %v959_v56  ;;  %v1157_v59 = vmax.f32 %v1870_v55, %v1156_v57 }
 0x3a1   : > { %1613 = vpow2.f32 %v960_v58  ;;  %v1158_v61 = vsub.f32 %v1870_v55, %v1157_v59  ;;  %1266 = vst.msk [vmem:[#allocation2 + $0x18] sm:$0xff] %vm455_vm0, %v1157_v59  ;;  %1163 = vperm.xlu1 %1608, %v1157_v59   ;;  %663 = vperm.xlu0 %1607, %v1874_v60   ;;  %v1257_v55 = vld [vmem:[#allocation4 + $0x18] sm:$0xff] }
 0x3a2   : > { %1615 = vpow2.f32 %v761_v1 }
 0x3a3   : > { %v1159_v30 = vmul.f32 1.442695, %v1158_v61 }
 0x3a5   : > { %782 = vrot.lane.b32.xlu1 %v1834_v19, %s1692_s10 }
 0x3a9   : > { %981 = vrot.lane.b32.xlu1 %v1834_v19, %s1693_s11 }
 0x3ab   : > { %v1883_v62 = vpop.eup %1613 }
 0x3ac   : > { %1061 = vperm.xlu0 %1607, %v1883_v62   ;;  %v1616_v2 = vpop.eup %1615  ;;  %v973_v40 = vmul.f32 %v1883_v62, %v972_v38 }
 0x3ad   : > { %1180 = vrot.lane.b32.xlu1 %v1834_v19, %s1694_s12 }
 0x3d1   : > { %581 = vadd.xlane.f32.xlu1 %v580_v0 }
 0x3e2   : > { %862 = vperm.xlu1 %1608, %v1616_v2  }
 0x418   : > { %v766_v4 = vpop.permute.xlu1 %765 }
 0x419   : > { %v768_v5 = vsub.f32 %v753_v36, %v766_v4  ;;  %v773_v36 = vld [vmem:[#allocation3 + $0x8] sm:$0xff] }
 0x41a   : > { %v774_v10 = vmul.f32 %v1616_v2, %v773_v36 }
 0x41b   : > { %v769_v6 = vmul.f32 1.442695, %v768_v5 }
 0x41c   : > { %v965_v7 = vpop.permute.xlu0 %964 }
 0x41d   : > { %1617 = vpow2.f32 %v769_v6  ;;  %v967_v8 = vsub.f32 %v952_v41, %v965_v7 }
 0x41f   : > { %v968_v11 = vmul.f32 1.442695, %v967_v8 }
 0x420   : > { %v1164_v12 = vpop.permute.xlu1 %1163  ;;  %v664_v13 = vpop.permute.xlu0 %663 }
 0x421   : > { %1619 = vpow2.f32 %v968_v11  ;;  %v1166_v14 = vsub.f32 %v1151_v46, %v1164_v12  ;;  %v666_v15 = vmul.f32 %v664_v13, %v660_v9 }
 0x423   : > { %v1167_v16 = vmul.f32 1.442695, %v1166_v14  ;;  %v667_v17 = vadd.f32 %v666_v15, %v1858_v31 }
 0x424   : > { %v783_v18 = vpop.permute.xlu1 %782 }
 0x425   : > { %1621 = vpow2.f32 %v1167_v16  ;;  %668 = vst.msk [vmem:[#allocation4] sm:$0xff] %vm464_vm1, %v667_v17  ;;  %1545 = vmatpush3.msra.mxu0 %v783_v18 }
 0x426   : > { %1554 = vmatprep.subr.mxu0 %v1689_v3  ;;  %1623 = vpow2.f32 %v1159_v30 }
 0x427   : > { %v1618_v19 = vpop.eup %1617 }
 0x428   : > { %v982_v20 = vpop.permute.xlu1 %981  ;;  %v771_v21 = vsel %vm1815_vm4, %v1618_v19, 0.0 }
 0x429   : > { %1547 = vmatmul.mubr.msk.f32.vlgmr.msra.gmra.mrb[2].mxu0 %vm464_vm1, %v771_v21  ;;  %v775_v22 = vsel %vm464_vm1, %v771_v21, 0.0 }
 0x42a   : > { %1555 = vmatpush3.msra.mxu0 %v982_v20  ;;  %776 = vadd.xlane.f32.xlu0 %v775_v22 }
 0x42b   : > { %v1620_v23 = vpop.eup %1619  ;;  %1556 = vmatprep.mubr.msk.f32.mxu0 %vm1690_vm2, %v1689_v3  ;;  %1564 = vmatprep.subr.mxu0 %v1689_v3 }
 0x42c   : > { %v1181_v24 = vpop.permute.xlu1 %1180  ;;  %v970_v25 = vsel %vm1815_vm4, %v1620_v23, 0.0 }
 0x42d   : > { %1557 = vmatmul.mubr.msk.f32.vlgmr.msra.gmra.mrb[4].mxu0 %vm464_vm1, %v970_v25  ;;  %v974_v26 = vsel %vm464_vm1, %v970_v25, 0.0 }
 0x42e   : > { %1565 = vmatpush3.msra.mxu0 %v1181_v24  ;;  %975 = vadd.xlane.f32.xlu0 %v974_v26 }
 0x42f   : > { %v1622_v27 = vpop.eup %1621  ;;  %1566 = vmatprep.mubr.msk.f32.mxu0 %vm1690_vm2, %v1689_v3  ;;  %v1062_v3 = vpop.permute.xlu0 %1061 }
 0x430   : > { %v1169_v28 = vsel %vm1815_vm4, %v1622_v27, 0.0  ;;  %v1624_v31 = vpop.eup %1623  ;;  %v1064_v54 = vmul.f32 %v1062_v3, %v1058_v50 }
 0x431   : > { %1567 = vmatmul.mubr.msk.f32.vlgmr.msra.gmra.mrb[6].mxu0 %vm464_vm1, %v1169_v28  ;;  %v1173_v29 = vsel %vm464_vm1, %v1169_v28, 0.0  ;;  %v1172_v45 = vmul.f32 %v1624_v31, %v1171_v43 }
 0x432   : > { %1174 = vadd.xlane.f32.xlu1 %v1173_v29 }
 0x444   : > { %1260 = vperm.xlu0 %1607, %v1624_v31  }
 0x45e   : > { %v582_v34 = vpop.xlane.xlu1 %581 }
 0x45f   : > { %v583_v35 = vadd.f32 %v582_v34, %v579_v33 }
 0x461   : > { %585 = vst.msk [vmem:[#allocation3] sm:$0xff] %vm455_vm0, %v583_v35 }
 0x462   : > { %v863_v41 = vpop.permute.xlu1 %862 }
 0x463   : > { %v865_v49 = vmul.f32 %v863_v41, %v859_v48 }
 0x4b7   : > { %v777_v37 = vpop.xlane.xlu0 %776 }
 0x4b8   : > { %v778_v39 = vadd.f32 %v777_v37, %v774_v10 }
 0x4ba   : > { %779 = vst.msk [vmem:[#allocation3 + $0x8] sm:$0xff] %vm455_vm0, %v778_v39 }
 0x4bb   : > { %v976_v42 = vpop.xlane.xlu0 %975 }
 0x4bc   : > { %v977_v44 = vadd.f32 %v976_v42, %v973_v40 }
 0x4be   : > { %978 = vst.msk [vmem:[#allocation3 + $0x10] sm:$0xff] %vm455_vm0, %v977_v44 }
 0x4bf   : > { %v1175_v46 = vpop.xlane.xlu1 %1174 }
 0x4c0   : > { %v1176_v47 = vadd.f32 %v1175_v46, %v1172_v45 }
 0x4c2   : > { %1177 = vst.msk [vmem:[#allocation3 + $0x18] sm:$0xff] %vm455_vm0, %v1176_v47 }
 0x4c3   : > { %v1261_v56 = vpop.permute.xlu0 %1260 }
 0x4c4   : > { %v1263_v60 = vmul.f32 %v1261_v56, %v1257_v55 }
 0x4fc   : > { %v854_v51 = vpop.f32.mrb[2].mxu0 }
 0x4fd   : > { %v866_v52 = vadd.f32 %v865_v49, %v854_v51  ;;  %v1548_v53 = vpop.f32.mrb[3].mxu0 }
 0x4ff   : > { %867 = vst.msk [vmem:[#allocation4 + $0x8] sm:$0xff] %vm464_vm1, %v866_v52 }
 0x500   : > { %v1053_v57 = vpop.f32.mrb[4].mxu0 }
 0x501   : > { %v1065_v58 = vadd.f32 %v1064_v54, %v1053_v57  ;;  %v1558_v59 = vpop.f32.mrb[5].mxu0 }
 0x503   : > { %1066 = vst.msk [vmem:[#allocation4 + $0x10] sm:$0xff] %vm464_vm1, %v1065_v58 }
 0x504   : > { %v1252_v61 = vpop.f32.mrb[6].mxu0 }
 0x505   : > { %v1264_v62 = vadd.f32 %v1263_v60, %v1252_v61  ;;  %v1568_v63 = vpop.f32.mrb[7].mxu0 }
 0x507   : > { %1265 = vst.msk [vmem:[#allocation4 + $0x18] sm:$0xff] %vm464_vm1, %v1264_v62 }
 0x508 PF: > { %v1284_v0 = vld [vmem:[#allocation3 + $0x8] sm:$0xff]  ;;  %v1322_v1 = vld [vmem:[#allocation3 + $0x18] sm:$0xff]  ;;  %v1303_v2 = vld [vmem:[#allocation3 + $0x10] sm:$0xff]  ;;  %v1695_v4 = vmov 0   ;;  %s1696_s18 = smov 8   ;;  %s1697_s19 = smov 16  }
 0x509   : > { %1625 = vset.pattern.permute.xlu0 %v1695_v4  ;;  %1626 = vset.pattern.permute.xlu1 %v1695_v4  ;;  %vm1285_vm5 = vcmp.eq.f32.partialorder %v1284_v0, 0.0  ;;  %vm1323_vm6 = vcmp.eq.f32.partialorder %v1322_v1, 0.0  ;;  %vm1304_vm7 = vcmp.eq.f32.partialorder %v1303_v2, 0.0  ;;  %v1270_v5 = vld [vmem:[#allocation3] sm:$0xff]  ;;  %v1289_v15 = vld [vmem:[#allocation4 + $0x8] sm:$0xff]  ;;  %s1698_s21 = smov 24  }
 0x50a   : > { %v1286_v6 = vsel %vm1285_vm5, 1.0, %v1284_v0  ;;  %v1324_v7 = vsel %vm1323_vm6, 1.0, %v1322_v1  ;;  %v1305_v8 = vsel %vm1304_vm7, 1.0, %v1303_v2  ;;  %vm1271_vm8 = vcmp.eq.f32.partialorder %v1270_v5, 0.0  ;;  %v1308_v20 = vld [vmem:[#allocation4 + $0x10] sm:$0xff]  ;;  %v1274_v22 = vld [vmem:[#allocation4] sm:$0xff] }
 0x50b   : > { %1627 = vrcp.f32 %v1286_v6  ;;  %v1272_v9 = vsel %vm1271_vm8, 1.0, %v1270_v5  ;;  %vm1300_vm9 = vcmask 130112   ;;  %vm1319_vm10 = vcmask 195712  }
 0x50c   : > { %1629 = vrcp.f32 %v1324_v7  ;;  %vm1338_vm11 = vcmask 261312  }
 0x50d   : > { %1631 = vrcp.f32 %v1305_v8 }
 0x50e   : > { %1633 = vrcp.f32 %v1272_v9  ;;  %v1327_v17 = vld [vmem:[#allocation4 + $0x18] sm:$0xff] }
 0x515   : > { %v1628_v11 = vpop.eup %1627 }
 0x516   : > { %v1630_v12 = vpop.eup %1629  ;;  %1292 = vperm.xlu0 %1625, %v1628_v11  }
 0x517   : > { %v1632_v13 = vpop.eup %1631  ;;  %1330 = vperm.xlu1 %1626, %v1630_v12  }
 0x518   : > { %v1634_v14 = vpop.eup %1633 }
 0x51a   : > { %1311 = vperm.xlu0 %1625, %v1632_v13  }
 0x51b   : > { %1277 = vperm.xlu1 %1626, %v1634_v14  }
 0x595   : > { %v1293_v16 = vpop.permute.xlu0 %1292 }
 0x596   : > { %v1295_v18 = vmul.f32 %v1293_v16, %v1289_v15  ;;  %v1331_v19 = vpop.permute.xlu1 %1330 }
 0x597   : > { %v1333_v21 = vmul.f32 %v1331_v19, %v1327_v17 }
 0x598   : > { %1297 = vrot.lane.b32.xlu0 %v1295_v18, %s1696_s18 }
 0x599   : > { %v1312_v23 = vpop.permute.xlu0 %1311 }
 0x59a   : > { %v1314_v24 = vmul.f32 %v1312_v23, %v1308_v20  ;;  %v1278_v25 = vpop.permute.xlu1 %1277 }
 0x59b   : > { %v1280_v26 = vmul.f32 %v1278_v25, %v1274_v22 }
 0x59c   : > { %1316 = vrot.lane.b32.xlu1 %v1314_v24, %s1697_s19  ;;  %1335 = vrot.lane.b32.xlu0 %v1333_v21, %s1698_s21 }
 0x59d   : > { %1282 = vst.msk [vmem:[%s1788_s20] sm:$0xff] %vm464_vm1, %v1280_v26 }
 0x60a   : > { %v1298_v27 = vpop.permute.xlu0 %1297 }
 0x60b   : > { %1301 = vst.msk [vmem:[%s1788_s20] sm:$0xff] %vm1300_vm9, %v1298_v27 }
 0x60e   : > { %v1317_v28 = vpop.permute.xlu1 %1316  ;;  %v1336_v29 = vpop.permute.xlu0 %1335 }
 0x60f   : > { %1320 = vst.msk [vmem:[%s1788_s20] sm:$0xff] %vm1319_vm10, %v1317_v28 }
 0x610   : > { %1339 = vst.msk [vmem:[%s1788_s20] sm:$0xff] %vm1338_vm11, %v1336_v29 }
 0x611 PF: > { %s26_s7 = sadd.s32 1, %s1683_s7   ;;  %s1942_s1 = smov %s1679_s30 }
 0x612   : > { %p23_p5 = scmp.ge.s32.totalorder %s26_s7, 4   ;;  %s1943_s30 = smov %s1945_s8 }
 0x614   :  { %25 = sbr.rel (!%p23_p5) target bundleno = 27 (0x1b), region = 102 }

</bundles_post_ra>
